<compile_context>
chip_gen: v7x
topology: tpu7x:2x2x1
jax: 0.10.0
libtpu: 0.0.40
codegen_flags: <defaults>
</compile_context>

<pallas_src>
import functools

import jax
import jax.numpy as jnp
from jax.experimental import pallas as pl
from jax.experimental.pallas import tpu as pltpu

LANE = 128


def _round_up(a: int, b: int) -> int:
    return ((a + b - 1) // b) * b


# ------------------------- Pallas kernels -------------------------

def gating_kernel(q_ref, w_ref, eps_ref, h_ref, *, num_experts):
    # One fused, lane-dense MXU pass in f32 (routing parity with the reference):
    #   proj = q @ [Wg | Wn | 0-pad]  -> (tg, 128)
    proj = jnp.dot(q_ref[...], w_ref[...], preferred_element_type=jnp.float32)
    n = jax.nn.softplus(proj[:, num_experts:num_experts + 1])   # noise scale (tg,1)
    # Lane-dense store of the full padded block; columns >= num_experts are
    # don't-care and get sliced off in the wrapper.
    h_ref[...] = proj + eps_ref[...] * n


def expert_kernel(x_ref, gw_ref, w1_ref, b1_ref, w2_ref, b2_ref, out_ref, *,
                  num_experts):
    # grid = (token_tiles,) only; all expert weights are VMEM-resident
    # (constant index_map) so the static expert loop is fully unrolled here.
    x = x_ref[...]                                              # (tm, dim) bf16
    acc = jnp.zeros(out_ref.shape, jnp.float32)
    for e in range(num_experts):
        # Expert MLP: bf16 matmuls on the MXU with f32 accumulation; the
        # bias/ReLU epilogue stays f32 (portable to v5e's non-bf16 VPU).
        h = jnp.dot(x, w1_ref[e], preferred_element_type=jnp.float32)
        h = jnp.maximum(h + b1_ref[e], 0.0).astype(jnp.bfloat16)  # Dropout=identity
        y = jnp.dot(h, w2_ref[e], preferred_element_type=jnp.float32) + b2_ref[e]
        # Gate weight for expert e: static lane slice of the lane-dense
        # (tm, 128) gate-weight block (no iota/where/XLU reduce).
        w_col = gw_ref[:, e:e + 1]                              # (tm, 1) f32
        acc = acc + w_col * y
    out_ref[...] = acc.astype(out_ref.dtype)


# ------------------------- wrappers -------------------------

def gating(query, gate_w, noise_w, eps, tg=512):
    """Noisy gate scores h = q@Wg + eps * softplus(q@Wn), computed in f32."""
    N, dim = query.shape
    E = gate_w.shape[1]
    gp = _round_up(E + 1, LANE)

    # Fuse [gate | noise] into one lane-dense (dim, 128) weight block.
    w_cat = jnp.concatenate([gate_w, noise_w], axis=1)
    w_cat = jnp.pad(w_cat, ((0, 0), (0, gp - (E + 1)))).astype(jnp.float32)
    eps_p = jnp.pad(eps.astype(jnp.float32), ((0, 0), (0, gp - E)))

    # Token-tile the gating call so q/eps/h stream through VMEM pipelined.
    tg = min(tg, _round_up(N, 8))
    n_pad = _round_up(N, tg)
    q = query.astype(jnp.float32)
    if n_pad != N:
        q = jnp.pad(q, ((0, n_pad - N), (0, 0)))
        eps_p = jnp.pad(eps_p, ((0, n_pad - N), (0, 0)))

    kernel = functools.partial(gating_kernel, num_experts=E)
    h = pl.pallas_call(
        kernel,
        out_shape=jax.ShapeDtypeStruct((n_pad, gp), jnp.float32),
        grid_spec=pltpu.PrefetchScalarGridSpec(
            num_scalar_prefetch=0,
            grid=(n_pad // tg,),
            in_specs=[
                pl.BlockSpec((tg, dim), lambda t: (t, 0)),   # q tile
                pl.BlockSpec((dim, gp), lambda t: (0, 0)),   # fused weights (resident)
                pl.BlockSpec((tg, gp), lambda t: (t, 0)),    # eps tile (lane-dense)
            ],
            out_specs=pl.BlockSpec((tg, gp), lambda t: (t, 0)),
        ),
        compiler_params=pltpu.CompilerParams(
            dimension_semantics=("parallel",),
        ),
    )(q, w_cat, eps_p)
    return h[:N, :E]


def moe_experts(x, gate_weights, w1, b1, w2, b2, tm=512):
    N, dim = x.shape
    E, _, H = w1.shape
    out_dim = w2.shape[-1]
    gp = _round_up(E, LANE)

    # Token tile: large enough to fill the MXU / amortize per-step overhead,
    # but keep >= 2 tiles whenever N allows so the "parallel" token axis can
    # shard across v7x's two TensorCores.
    tm = min(tm, _round_up(N, 8))
    if _round_up(N, tm) == tm and N > 128:
        tm = max(128, _round_up((N + 1) // 2, 8))
    n_pad = _round_up(N, tm)

    # Padded rows have zero gate weight -> contribute nothing; sliced off below.
    if n_pad != N:
        x = jnp.pad(x, ((0, n_pad - N), (0, 0)))
    gw = jnp.zeros((n_pad, gp), jnp.float32).at[:N, :E].set(
        gate_weights.astype(jnp.float32))

    x_bf = x.astype(jnp.bfloat16)
    w1_bf = w1.astype(jnp.bfloat16)
    w2_bf = w2.astype(jnp.bfloat16)
    b1_f = b1.astype(jnp.float32)
    b2_f = b2.astype(jnp.float32)

    grid = (n_pad // tm,)

    # Explicit VMEM budget: resident expert weights (single copy) +
    # double-buffered activation tiles + f32 intermediates, capped well under
    # v7x's 64 MiB physical VMEM per TensorCore.
    bf16_b, f32_b = 2, 4
    est = (
        2 * tm * dim * bf16_b                      # x tile (double-buffered)
        + 2 * tm * gp * f32_b                      # gate-weight tile (lane-dense)
        + 2 * tm * out_dim * f32_b                 # out tile
        + E * (dim * H + H * out_dim) * bf16_b     # resident W1/W2 (all experts)
        + E * 8 * (H + out_dim) * f32_b            # biases (sublane-padded)
        + E * tm * H * f32_b                       # unrolled f32 intermediates (bound)
        + tm * out_dim * f32_b                     # f32 accumulator
    )
    vmem_limit = int(min(48 * 1024 * 1024, max(16 * 1024 * 1024, 2 * est)))

    kernel = functools.partial(expert_kernel, num_experts=E)
    out = pl.pallas_call(
        kernel,
        out_shape=jax.ShapeDtypeStruct((n_pad, out_dim), jnp.float32),
        grid_spec=pltpu.PrefetchScalarGridSpec(
            num_scalar_prefetch=0,
            grid=grid,
            in_specs=[
                pl.BlockSpec((tm, dim), lambda t: (t, 0)),          # x tile
                pl.BlockSpec((tm, gp), lambda t: (t, 0)),           # gate weights
                pl.BlockSpec((E, dim, H), lambda t: (0, 0, 0)),     # W1 (resident)
                pl.BlockSpec((E, 1, H), lambda t: (0, 0, 0)),       # b1 (resident)
                pl.BlockSpec((E, H, out_dim), lambda t: (0, 0, 0)), # W2 (resident)
                pl.BlockSpec((E, 1, out_dim), lambda t: (0, 0, 0)), # b2 (resident)
            ],
            out_specs=pl.BlockSpec((tm, out_dim), lambda t: (t, 0)),
        ),
        compiler_params=pltpu.CompilerParams(
            dimension_semantics=("parallel",),
            vmem_limit_bytes=vmem_limit,
        ),
    )(x_bf, gw, w1_bf, b1_f, w2_bf, b2_f)
    return out[:N]


def moe_forward(params, x, eps, query=None, k=2):
    if query is None:
        query = x
    E = params["gate_w"].shape[1]

    # noisy gate scores (Pallas kernel, f32 for routing parity)
    h = gating(query, params["gate_w"], params["noise_w"], eps)

    # mask EXACTLY the k smallest scores per row (matches torch.topk largest=False)
    _, small_idx = jax.lax.top_k(-h, k)
    small_mask = jnp.any(jax.nn.one_hot(small_idx, E, dtype=jnp.bool_), axis=1)
    h_masked = jnp.where(small_mask, -jnp.inf, h)
    L = jax.nn.softmax(h_masked, axis=1)

    # load-balancing loss: (std/mean)^2 of per-expert total prob (torch std is unbiased)
    tmp = L.sum(axis=0)
    loss = (jnp.std(tmp, ddof=1) / jnp.mean(tmp)) ** 2

    # keep EXACTLY the top-k softmax weights per row (others -> 0)
    top_vals, top_idx = jax.lax.top_k(L, k)
    gate_weights = jnp.sum(
        jax.nn.one_hot(top_idx, E, dtype=L.dtype) * top_vals[..., None], axis=1)

    out = moe_experts(x, gate_weights,
                      params["w1"], params["b1"], params["w2"], params["b2"])
    return out, loss


# ------------------------- deterministic parameter init -------------------------

def init_params(key, dim, hidden_dim, out_dim, num_experts):
    ks = jax.random.split(key, 6)

    def lin(k, fan_in, shape):
        bound = 1.0 / jnp.sqrt(jnp.float32(fan_in))
        return jax.random.uniform(k, shape, jnp.float32, -bound, bound)

    return dict(
        gate_w=lin(ks[0], dim, (dim, num_experts)),        # gate: Linear(dim, E), no bias
        noise_w=lin(ks[1], dim, (dim, 1)),                 # noise: Linear(dim, 1), no bias
        w1=lin(ks[2], dim, (num_experts, dim, hidden_dim)),
        b1=lin(ks[3], dim, (num_experts, 1, hidden_dim)),
        w2=lin(ks[4], hidden_dim, (num_experts, hidden_dim, out_dim)),
        b2=lin(ks[5], hidden_dim, (num_experts, 1, out_dim)),
    )


if __name__ == "__main__":
    # small but lane-dense / MXU-friendly shapes (multiples of 128)
    dim, hidden_dim, out_dim = 128, 256, 128
    num_experts, k = 4, 2
    N = 256  # tokens

    key = jax.random.PRNGKey(0)
    kx, keps, kp = jax.random.split(key, 3)
    x = jax.random.normal(kx, (N, dim), jnp.float32)
    eps = jax.random.normal(keps, (N, num_experts), jnp.float32)  # torch.randn(g.shape)
    params = init_params(kp, dim, hidden_dim, out_dim, num_experts)

    out, loss = moe_forward(params, x, eps, k=k)
    jax.block_until_ready((out, loss))
    assert out.shape == (N, out_dim)
    assert loss.shape == ()
    assert bool(jnp.isfinite(loss)) and bool(jnp.isfinite(out).all())
    print("KERNEL_OK")
</pallas_src>

<mosaic_0001>
module attributes {stable_mosaic.version = 11 : i64} {
  func.func @gating_kernel(%arg0: i32, %arg1: memref<256x128xf32, #tpu.memory_space<vmem>>, %arg2: memref<128x128xf32, #tpu.memory_space<vmem>>, %arg3: memref<256x128xf32, #tpu.memory_space<vmem>>, %arg4: memref<256x128xf32, #tpu.memory_space<vmem>>) attributes {dimension_semantics = [#tpu.dimension_semantics<parallel>], iteration_bounds = array<i64: 1>, scalar_prefetch = 0 : i64, scratch_operands = 0 : i64, tpu.core_type = #tpu.core_type<tc>, window_params = [{transform_indices = @transform_0, window_bounds = array<i64: 256, 128>}, {pipeline_mode = #tpu.pipeline_mode<synchronous>, transform_indices = @transform_1, window_bounds = array<i64: 128, 128>}, {transform_indices = @transform_2, window_bounds = array<i64: 256, 128>}, {transform_indices = @transform_3, window_bounds = array<i64: 256, 128>}]} {
    %c0 = arith.constant 0 : index
    %c0_0 = arith.constant 0 : index
    %0 = vector.load %arg1[%c0, %c0_0] : memref<256x128xf32, #tpu.memory_space<vmem>>, vector<256x128xf32>
    %c0_1 = arith.constant 0 : index
    %c0_2 = arith.constant 0 : index
    %1 = vector.load %arg2[%c0_1, %c0_2] : memref<128x128xf32, #tpu.memory_space<vmem>>, vector<128x128xf32>
    %cst = arith.constant dense<0.000000e+00> : vector<256x128xf32>
    %2 = tpu.matmul %0, %1, %cst {dimension_numbers = #tpu.dot_dimension_numbers<[1], [0], [0], [1], [0, 0, 1, 1], [], []>} : vector<256x128xf32>, vector<128x128xf32>, vector<256x128xf32> -> vector<256x128xf32>
    %3 = vector.extract_strided_slice %2 {offsets = [0, 4], sizes = [256, 1], strides = [1, 1]} : vector<256x128xf32> to vector<256x1xf32>
    %cst_3 = arith.constant 0.000000e+00 : f32
    %4 = vector.broadcast %cst_3 : f32 to vector<256x1xf32>
    %5 = arith.maximumf %3, %4 : vector<256x1xf32>
    %6 = vector.broadcast %cst_3 : f32 to vector<256x1xf32>
    %7 = arith.subf %3, %6 : vector<256x1xf32>
    %8 = arith.cmpf one, %7, %7 : vector<256x1xf32>
    %9 = vector.broadcast %cst_3 : f32 to vector<256x1xf32>
    %10 = arith.addf %3, %9 : vector<256x1xf32>
    %11 = math.absf %7 : vector<256x1xf32>
    %cst_4 = arith.constant 0.000000e+00 : f32
    %12 = vector.broadcast %cst_4 : f32 to vector<256x1xf32>
    %13 = arith.subf %12, %11 : vector<256x1xf32>
    %14 = math.exp %13 : vector<256x1xf32>
    %15 = math.log1p %14 : vector<256x1xf32>
    %16 = arith.addf %5, %15 : vector<256x1xf32>
    %17 = arith.select %8, %10, %16 : vector<256x1xi1>, vector<256x1xf32>
    %c0_5 = arith.constant 0 : index
    %c0_6 = arith.constant 0 : index
    %18 = vector.load %arg3[%c0_5, %c0_6] : memref<256x128xf32, #tpu.memory_space<vmem>>, vector<256x128xf32>
    %19 = vector.broadcast %17 : vector<256x1xf32> to vector<256x128xf32>
    %20 = arith.mulf %18, %19 : vector<256x128xf32>
    %21 = arith.addf %2, %20 : vector<256x128xf32>
    %c0_7 = arith.constant 0 : index
    %c0_8 = arith.constant 0 : index
    %22 = vector.load %arg4[%c0_7, %c0_8] : memref<256x128xf32, #tpu.memory_space<vmem>>, vector<256x128xf32>
    tpu.vector_store %arg4[%c0_7, %c0_8], %21 {strides = array<i32>} : memref<256x128xf32, #tpu.memory_space<vmem>>, vector<256x128xf32>,
    return
  }
  func.func @transform_0(%arg0: i32) -> (i32, i32) {
    %c0_i32 = arith.constant 0 : i32
    %c0_i32_0 = arith.constant 0 : i32
    return %arg0, %c0_i32 : i32, i32
  }
  func.func @transform_1(%arg0: i32) -> (i32, i32) {
    %c0_i32 = arith.constant 0 : i32
    %c0_i32_0 = arith.constant 0 : i32
    %c0_i32_1 = arith.constant 0 : i32
    return %c0_i32, %c0_i32_0 : i32, i32
  }
  func.func @transform_2(%arg0: i32) -> (i32, i32) {
    %c0_i32 = arith.constant 0 : i32
    %c0_i32_0 = arith.constant 0 : i32
    return %arg0, %c0_i32 : i32, i32
  }
  func.func @transform_3(%arg0: i32) -> (i32, i32) {
    %c0_i32 = arith.constant 0 : i32
    %c0_i32_0 = arith.constant 0 : i32
    return %arg0, %c0_i32 : i32, i32
  }
}

</mosaic_0001>

<bundles_post_ra>
// kernel: tpu_custom_call.1
= control target key start
LH: loop header
LB: loop body
LE: loop exit
PB: predicated region body
PF: predicated region fallthrough
CT: control target
= control target key end

     0   :  { %8 = vsyncpa [#allocation3], 0  ;;  %s2391_s0 = inlined_call_operand.hbm [shape: f32[256,128], index: 0, kind: input, shape index: {}]   ;;  %s2392_s1 = inlined_call_operand.hbm [shape: f32[128,128], index: 1, kind: input, shape index: {}]   ;;  %s2393_s2 = inlined_call_operand.hbm [shape: f32[256,128], index: 2, kind: input, shape index: {}]   ;;  %s2394_s3 = inlined_call_operand.hbm [shape: f32[256,128], index: 3, kind: output, shape index: {}]  }
   0x1   :  { %9 = vsyncpa [#allocation6], 0 }
   0x2   :  { %10 = vsyncpa [#allocation4], 0  ;;  %s1618_s12 = smov [#allocation5]   ;;  %s1619_s14 = smov [#allocation2]  }
   0x3   :  { %s28_s13 = sshll.u32 %s1618_s12, 4  ;;  %s16_s15 = sshll.u32 %s1619_s14, 4  ;;  %s29_s13 = int_to_ptr.vmem [resolvable:$true] %s28_s13  ;;  %s1645_s15 = int_to_ptr.vmem [resolvable:$true] %s16_s15 }
   0x4   :  { %s1524_s18 = scalar_lea.hbm %s2392_s1, 2048 }
   0x5   :  { %p1525_p0 = scmp.ne.s32.totalorder %s2392_s1, %s1524_s18  ;;  %p1528_p1 = scmp.lt.u32.totalorder %s1524_s18, %s2392_s1 }
   0x7   :  { %p1530_p2 = pnand %p1528_p1, %p1525_p0 }
   0x9   :  { %1533 = shalt.err (!%p1530_p2)
}
   0xa   :  { %s1534_s23 = scalar_lea.vmem %s29_s13, 2048  ;;  %p1539_p4 = scmp.lt.s32.totalorder %s29_s13, %s29_s13 }
   0xb   :  { %p1535_p3 = scmp.ne.s32.totalorder %s29_s13, %s1534_s23  ;;  %p1540_p5 = scmp.lt.s32.totalorder %s1534_s23, %s1534_s23 }
   0xd   :  { %p1541_p6 = por %p1540_p5, %p1539_p4 }
   0xf   :  { %p1542_p7 = pnand %p1541_p6, %p1535_p3 }
  0x11   :  { %1545 = shalt.err (!%p1542_p7)
}
  0x12   :  { %s1620_s24 = smov 128   ;;  %s1621_s25 = smov 8  }
  0x13   :  { %34 = dma.hbm_to_vmem [thread:$0]  %s2392_s1, 2048, %s29_s13, [#allocation6], %s1620_s24, %s1620_s24, %s1621_s25  }
  0x14   :  { %s1546_s30 = scalar_lea.hbm %s2391_s0, 4096 }
  0x15   :  { %p1547_p8 = scmp.ne.s32.totalorder %s2391_s0, %s1546_s30  ;;  %p1550_p9 = scmp.lt.u32.totalorder %s1546_s30, %s2391_s0 }
  0x17   :  { %p1552_p10 = pnand %p1550_p9, %p1547_p8 }
  0x19   :  { %1555 = shalt.err (!%p1552_p10)
}
  0x1a   :  { %s1556_s8 = scalar_lea.vmem %s1645_s15, 4096  ;;  %p1561_p12 = scmp.lt.s32.totalorder %s1645_s15, %s1645_s15 }
  0x1b   :  { %p1557_p11 = scmp.ne.s32.totalorder %s1645_s15, %s1556_s8  ;;  %p1562_p13 = scmp.lt.s32.totalorder %s1556_s8, %s1556_s8 }
  0x1d   :  { %p1563_p0 = por %p1562_p13, %p1561_p12 }
  0x1f   :  { %p1564_p1 = pnand %p1563_p0, %p1557_p11 }
  0x21   :  { %1567 = shalt.err (!%p1564_p1)
}
  0x22   :  { %22 = dma.hbm_to_vmem [thread:$0]  %s2391_s0, 4096, %s1645_s15, [#allocation3], %s1620_s24, %s1620_s24, %s1621_s25  }
  0x23   :  { %s1622_s10 = smov [#allocation7]   ;;  %s1568_s14 = scalar_lea.hbm %s2393_s2, 4096 }
  0x24   :  { %s40_s11 = sshll.u32 %s1622_s10, 4  ;;  %p1569_p2 = scmp.ne.s32.totalorder %s2393_s2, %s1568_s14  ;;  %s41_s11 = int_to_ptr.vmem [resolvable:$true] %s40_s11 }
  0x25   :  { %p1572_p3 = scmp.lt.u32.totalorder %s1568_s14, %s2393_s2 }
  0x27   :  { %p1574_p4 = pnand %p1572_p3, %p1569_p2 }
  0x29   :  { %1577 = shalt.err (!%p1574_p4)
}
  0x2a   :  { %s1578_s20 = scalar_lea.vmem %s41_s11, 4096  ;;  %p1583_p6 = scmp.lt.s32.totalorder %s41_s11, %s41_s11 }
  0x2b   :  { %p1579_p5 = scmp.ne.s32.totalorder %s41_s11, %s1578_s20  ;;  %p1584_p7 = scmp.lt.s32.totalorder %s1578_s20, %s1578_s20 }
  0x2d   :  { %p1585_p8 = por %p1584_p7, %p1583_p6 }
  0x2f   :  { %p1586_p9 = pnand %p1585_p8, %p1579_p5 }
  0x31   :  { %1589 = shalt.err (!%p1586_p9)
}
  0x32   :  { %46 = dma.hbm_to_vmem [thread:$0]  %s2393_s2, 4096, %s41_s11, [#allocation6], %s1620_s24, %s1620_s24, %s1621_s25  }
  0x33   :  { %1612 = dma.done.wait [#allocation3], 4096  }
  0x34   :  { %1613 = vsyncadd [#allocation3], 4294963200 }
  0x35   :  { %1614 = dma.done.wait [#allocation6], 6144  }
  0x36   :  { %1615 = vsyncadd [#allocation6], 4294961152  ;;  %v88_v0 = vld [vmem:[#allocation5] sm:$0xff]  ;;  %v89_v1 = vld [vmem:[#allocation5 + $0x8] sm:$0xff]  ;;  %v1623_v56 = vmov 4   ;;  %s1624_s2 = smov [#allocation8]  }
  0x37   :  { %v90_v2 = vld [vmem:[#allocation5 + $0x10] sm:$0xff]  ;;  %v1339_v3 = vpack.c.bf16 %v89_v1, %v88_v0  ;;  %v91_v4 = vld [vmem:[#allocation5 + $0x18] sm:$0xff]  ;;  %v92_v6 = vld [vmem:[#allocation5 + $0x20] sm:$0xff]  ;;  %1395 = vset.pattern.permute.xlu1 %v1623_v56  ;;  %1394 = vset.pattern.permute.xlu0 %v1623_v56  ;;  %s1198_s21 = sshll.u32 %s1624_s2, 4  ;;  %s1199_s21 = int_to_ptr.vmem [resolvable:$true] %s1198_s21 }
  0x38   :  { %v1343_v5 = vpack.c.bf16 %v91_v4, %v90_v2  ;;  %v93_v7 = vld [vmem:[#allocation5 + $0x28] sm:$0xff]  ;;  %v56_v9 = vld [vmem:[#allocation2] sm:$0xff]  ;;  %v94_v11 = vld [vmem:[#allocation5 + $0x30] sm:$0xff]  ;;  %s1590_s22 = scalar_lea.vmem %s1199_s21, 4096  ;;  %p1595_p11 = scmp.lt.s32.totalorder %s1199_s21, %s1199_s21 }
  0x39   :  { %1340 = vmatprep.subr.bf16.mxu0 %v1339_v3  ;;  %1371 = vmatprep.subr.bf16.mxu1 %v1339_v3  ;;  %v1347_v8 = vpack.c.bf16 %v93_v7, %v92_v6  ;;  %v72_v10 = vld [vmem:[#allocation2 + $0x80] sm:$0xff]  ;;  %v95_v12 = vld [vmem:[#allocation5 + $0x38] sm:$0xff]  ;;  %v97_v15 = vld [vmem:[#allocation5 + $0x48] sm:$0xff]  ;;  %p1591_p10 = scmp.ne.s32.totalorder %s1199_s21, %s1590_s22  ;;  %p1596_p12 = scmp.lt.s32.totalorder %s1590_s22, %s1590_s22 }
  0x3a   :  { %1342 = vmatpush3.bf16.msra.mxu0 %v1339_v3  ;;  %1379 = vmatpush3.bf16.msra.mxu1 %v1339_v3  ;;  %v1351_v13 = vpack.c.bf16 %v95_v12, %v94_v11  ;;  %v96_v14 = vld [vmem:[#allocation5 + $0x40] sm:$0xff]  ;;  %v98_v17 = vld [vmem:[#allocation5 + $0x50] sm:$0xff]  ;;  %v99_v18 = vld [vmem:[#allocation5 + $0x58] sm:$0xff] }
  0x3b   :  { %1344 = vmatprep.subr.bf16.mxu0 %v1343_v5  ;;  %1372 = vmatprep.subr.bf16.mxu1 %v1343_v5  ;;  %v1355_v16 = vpack.c.bf16 %v97_v15, %v96_v14  ;;  %v1359_v19 = vpack.c.bf16 %v99_v18, %v98_v17  ;;  %v100_v20 = vld [vmem:[#allocation5 + $0x60] sm:$0xff]  ;;  %v101_v21 = vld [vmem:[#allocation5 + $0x68] sm:$0xff]  ;;  %v102_v23 = vld [vmem:[#allocation5 + $0x70] sm:$0xff]  ;;  %p1597_p13 = por %p1596_p12, %p1595_p11 }
  0x3c   :  { %1291 = vmatprep.mubr.f32.mxu0 %v56_v9  ;;  %1315 = vmatprep.mubr.f32.mxu1 %v72_v10  ;;  %v1363_v22 = vpack.c.bf16 %v101_v21, %v100_v20  ;;  %v103_v24 = vld [vmem:[#allocation5 + $0x78] sm:$0xff]  ;;  %v57_v26 = vld [vmem:[#allocation2 + $0x8] sm:$0xff]  ;;  %v58_v28 = vld [vmem:[#allocation2 + $0x10] sm:$0xff] }
  0x3d   :  { %v1367_v25 = vpack.c.bf16 %v103_v24, %v102_v23  ;;  %v73_v27 = vld [vmem:[#allocation2 + $0x88] sm:$0xff]  ;;  %v74_v29 = vld [vmem:[#allocation2 + $0x90] sm:$0xff]  ;;  %v59_v30 = vld [vmem:[#allocation2 + $0x18] sm:$0xff]  ;;  %p1598_p0 = pnand %p1597_p13, %p1591_p10 }
  0x3e   :  { %1346 = vmatpush3.bf16.msra.mxu0 %v1343_v5  ;;  %1380 = vmatpush3.bf16.msra.mxu1 %v1343_v5  ;;  %v75_v31 = vld [vmem:[#allocation2 + $0x98] sm:$0xff]  ;;  %v60_v32 = vld [vmem:[#allocation2 + $0x20] sm:$0xff]  ;;  %v61_v34 = vld [vmem:[#allocation2 + $0x28] sm:$0xff] }
  0x3f   :  { %1348 = vmatprep.subr.bf16.mxu0 %v1347_v8  ;;  %1373 = vmatprep.subr.bf16.mxu1 %v1347_v8  ;;  %v76_v33 = vld [vmem:[#allocation2 + $0xa0] sm:$0xff]  ;;  %v77_v35 = vld [vmem:[#allocation2 + $0xa8] sm:$0xff]  ;;  %v62_v36 = vld [vmem:[#allocation2 + $0x30] sm:$0xff] }
  0x40   :  { %v78_v37 = vld [vmem:[#allocation2 + $0xb0] sm:$0xff]  ;;  %v63_v38 = vld [vmem:[#allocation2 + $0x38] sm:$0xff]  ;;  %v64_v40 = vld [vmem:[#allocation2 + $0x40] sm:$0xff] }
  0x41   :  { %v79_v39 = vld [vmem:[#allocation2 + $0xb8] sm:$0xff]  ;;  %v80_v41 = vld [vmem:[#allocation2 + $0xc0] sm:$0xff]  ;;  %v65_v42 = vld [vmem:[#allocation2 + $0x48] sm:$0xff] }
  0x42   :  { %1350 = vmatpush3.bf16.msra.mxu0 %v1347_v8  ;;  %1381 = vmatpush3.bf16.msra.mxu1 %v1347_v8  ;;  %v81_v43 = vld [vmem:[#allocation2 + $0xc8] sm:$0xff]  ;;  %v66_v44 = vld [vmem:[#allocation2 + $0x50] sm:$0xff]  ;;  %v67_v46 = vld [vmem:[#allocation2 + $0x58] sm:$0xff] }
  0x43   :  { %1352 = vmatprep.subr.bf16.mxu0 %v1351_v13  ;;  %1374 = vmatprep.subr.bf16.mxu1 %v1351_v13  ;;  %v82_v45 = vld [vmem:[#allocation2 + $0xd0] sm:$0xff]  ;;  %v83_v47 = vld [vmem:[#allocation2 + $0xd8] sm:$0xff]  ;;  %v68_v48 = vld [vmem:[#allocation2 + $0x60] sm:$0xff] }
  0x44   :  { %v84_v49 = vld [vmem:[#allocation2 + $0xe0] sm:$0xff]  ;;  %v69_v50 = vld [vmem:[#allocation2 + $0x68] sm:$0xff]  ;;  %v70_v52 = vld [vmem:[#allocation2 + $0x70] sm:$0xff] }
  0x45   :  { %v85_v51 = vld [vmem:[#allocation2 + $0xe8] sm:$0xff]  ;;  %v86_v53 = vld [vmem:[#allocation2 + $0xf0] sm:$0xff]  ;;  %v71_v54 = vld [vmem:[#allocation2 + $0x78] sm:$0xff] }
  0x46   :  { %1354 = vmatpush3.bf16.msra.mxu0 %v1351_v13  ;;  %1382 = vmatpush3.bf16.msra.mxu1 %v1351_v13  ;;  %v87_v55 = vld [vmem:[#allocation2 + $0xf8] sm:$0xff] }
  0x47   :  { %1356 = vmatprep.subr.bf16.mxu0 %v1355_v16  ;;  %1375 = vmatprep.subr.bf16.mxu1 %v1355_v16 }
  0x4a   :  { %1358 = vmatpush3.bf16.msra.mxu0 %v1355_v16  ;;  %1383 = vmatpush3.bf16.msra.mxu1 %v1355_v16 }
  0x4b   :  { %1360 = vmatprep.subr.bf16.mxu0 %v1359_v19  ;;  %1376 = vmatprep.subr.bf16.mxu1 %v1359_v19 }
  0x4e   :  { %1362 = vmatpush3.bf16.msra.mxu0 %v1359_v19  ;;  %1384 = vmatpush3.bf16.msra.mxu1 %v1359_v19 }
  0x4f   :  { %1364 = vmatprep.subr.bf16.mxu0 %v1363_v22  ;;  %1377 = vmatprep.subr.bf16.mxu1 %v1363_v22 }
  0x52   :  { %1366 = vmatpush3.bf16.msra.mxu0 %v1363_v22  ;;  %1385 = vmatpush3.bf16.msra.mxu1 %v1363_v22 }
  0x53   :  { %1368 = vmatprep.subr.bf16.mxu0 %v1367_v25  ;;  %1378 = vmatprep.subr.bf16.mxu1 %v1367_v25 }
  0x56   :  { %1370 = vmatpush3.bf16.msra.mxu0 %v1367_v25  ;;  %1386 = vmatpush3.bf16.msra.mxu1 %v1367_v25 }
  0x59   :  { %1292 = vmatmul.mubr.f32.vlgmr.msra.gmra.mrb[0].mxu0 %v57_v26  ;;  %1316 = vmatmul.mubr.f32.vlgmr.msra.gmra.mrb[0].mxu1 %v73_v27 }
  0x5a   :  { %1294 = vmatprep.mubr.f32.mxu0 %v58_v28  ;;  %1318 = vmatprep.mubr.f32.mxu1 %v74_v29 }
  0x5d   :  { %1295 = vmatmul.mubr.f32.gmra.mrb[2].mxu0 %v59_v30  ;;  %1319 = vmatmul.mubr.f32.gmra.mrb[2].mxu1 %v75_v31 }
  0x5e   :  { %1297 = vmatprep.mubr.f32.mxu0 %v60_v32  ;;  %1321 = vmatprep.mubr.f32.mxu1 %v76_v33 }
  0x61   :  { %1298 = vmatmul.mubr.f32.gmra.mrb[4].mxu0 %v61_v34  ;;  %1322 = vmatmul.mubr.f32.gmra.mrb[4].mxu1 %v77_v35 }
  0x62   :  { %1300 = vmatprep.mubr.f32.mxu0 %v62_v36  ;;  %1324 = vmatprep.mubr.f32.mxu1 %v78_v37 }
  0x65   :  { %1301 = vmatmul.mubr.f32.gmra.mrb[6].mxu0 %v63_v38  ;;  %1325 = vmatmul.mubr.f32.gmra.mrb[6].mxu1 %v79_v39 }
  0x66   :  { %1303 = vmatprep.mubr.f32.mxu0 %v64_v40  ;;  %1327 = vmatprep.mubr.f32.mxu1 %v80_v41 }
  0x69   :  { %1304 = vmatmul.mubr.f32.gmra.mrb[8].mxu0 %v65_v42  ;;  %1328 = vmatmul.mubr.f32.gmra.mrb[8].mxu1 %v81_v43 }
  0x6a   :  { %1306 = vmatprep.mubr.f32.mxu0 %v66_v44  ;;  %1330 = vmatprep.mubr.f32.mxu1 %v82_v45 }
  0x6d   :  { %1307 = vmatmul.mubr.f32.gmra.mrb[10].mxu0 %v67_v46  ;;  %1331 = vmatmul.mubr.f32.gmra.mrb[10].mxu1 %v83_v47 }
  0x6e   :  { %1309 = vmatprep.mubr.f32.mxu0 %v68_v48  ;;  %1333 = vmatprep.mubr.f32.mxu1 %v84_v49 }
  0x71   :  { %1310 = vmatmul.mubr.f32.gmra.mrb[12].mxu0 %v69_v50  ;;  %1334 = vmatmul.mubr.f32.gmra.mrb[12].mxu1 %v85_v51 }
  0x72   :  { %1312 = vmatprep.mubr.f32.mxu0 %v70_v52  ;;  %1336 = vmatprep.mubr.f32.mxu1 %v86_v53 }
  0x75   :  { %1313 = vmatmul.mubr.f32.gmra.mrb[14].mxu0 %v71_v54  ;;  %1337 = vmatmul.mubr.f32.gmra.mrb[14].mxu1 %v87_v55 }
 0x12c   :  { %v1697_v57 = vpop.f32.mrb[0].mxu0  ;;  %v1699_v58 = vpop.f32.mrb[0].mxu1 }
 0x12d   :  { %v426_v59 = vand.u32 2147483647, %v1697_v57  ;;  %v442_v60 = vand.u32 2147483647, %v1699_v58  ;;  %v1703_v61 = vpop.f32.mrb[1].mxu0  ;;  %v1705_v62 = vpop.f32.mrb[1].mxu1  ;;  %vm378_vm1 = vcmp.ne.f32.partialorder %v1699_v58, %v1699_v58  ;;  %vm362_vm2 = vcmp.ne.f32.partialorder %v1697_v57, %v1697_v57 }
 0x12e   :  { %v425_v63 = vand.u32 2147483647, %v1703_v61  ;;  %v441_v0 = vand.u32 2147483647, %v1705_v62  ;;  %vm361_vm8 = vcmp.ne.f32.partialorder %v1703_v61, %v1703_v61  ;;  %vm377_vm10 = vcmp.ne.f32.partialorder %v1705_v62, %v1705_v62 }
 0x12f   :  { %v458_v1 = vsub.f32 0.0, %v426_v59  ;;  %v474_v2 = vsub.f32 0.0, %v442_v60 }
 0x130   :  { %v457_v3 = vsub.f32 0.0, %v425_v63  ;;  %v1709_v4 = vpop.f32.mrb[2].mxu0  ;;  %v1711_v5 = vpop.f32.mrb[2].mxu1  ;;  %v473_v6 = vsub.f32 0.0, %v441_v0 }
 0x131   :  { %v428_v7 = vand.u32 2147483647, %v1709_v4  ;;  %v491_v8 = vmul.f32 1.442695, %v458_v1  ;;  %v523_v9 = vmul.f32 1.442695, %v474_v2  ;;  %vm364_vm5 = vcmp.ne.f32.partialorder %v1709_v4, %v1709_v4 }
 0x132   :  { %v444_v10 = vand.u32 2147483647, %v1711_v5  ;;  %v489_v11 = vmul.f32 1.442695, %v457_v3  ;;  %v1715_v13 = vpop.f32.mrb[3].mxu0  ;;  %v1717_v14 = vpop.f32.mrb[3].mxu1  ;;  %vm380_vm9 = vcmp.ne.f32.partialorder %v1711_v5, %v1711_v5 }
 0x133   :  { %v460_v12 = vsub.f32 0.0, %v428_v7  ;;  %v427_v16 = vand.u32 2147483647, %v1715_v13  ;;  %v443_v17 = vand.u32 2147483647, %v1717_v14  ;;  %1396 = vpow2.f32 %v491_v8 }
 0x134   :  { %v476_v15 = vsub.f32 0.0, %v444_v10  ;;  %v1721_v18 = vpop.f32.mrb[4].mxu0  ;;  %v521_v19 = vmul.f32 1.442695, %v473_v6  ;;  %v1724_v21 = vpop.f32.mrb[4].mxu1  ;;  %1398 = vpow2.f32 %v523_v9  ;;  %vm363_vm13 = vcmp.ne.f32.partialorder %v1715_v13, %v1715_v13 }
 0x135   :  { %v430_v20 = vand.u32 2147483647, %v1721_v18  ;;  %v1726_v22 = vpop.f32.mrb[5].mxu0  ;;  %v495_v23 = vmul.f32 1.442695, %v460_v12  ;;  %v459_v24 = vsub.f32 0.0, %v427_v16  ;;  %1400 = vpow2.f32 %v489_v11 }
 0x136   :  { %v475_v25 = vsub.f32 0.0, %v443_v17  ;;  %v1728_v26 = vpop.f32.mrb[5].mxu1  ;;  %v446_v28 = vand.u32 2147483647, %v1724_v21  ;;  %v429_v29 = vand.u32 2147483647, %v1726_v22  ;;  %1402 = vpow2.f32 %v521_v19 }
 0x137   :  { %v462_v27 = vsub.f32 0.0, %v430_v20  ;;  %v527_v30 = vmul.f32 1.442695, %v476_v15  ;;  %v493_v31 = vmul.f32 1.442695, %v459_v24  ;;  %1404 = vpow2.f32 %v495_v23 }
 0x138   :  { %v445_v32 = vand.u32 2147483647, %v1728_v26  ;;  %v525_v33 = vmul.f32 1.442695, %v475_v25  ;;  %v478_v34 = vsub.f32 0.0, %v446_v28  ;;  %v461_v35 = vsub.f32 0.0, %v429_v29 }
 0x139   :  { %v1733_v36 = vpop.f32.mrb[6].mxu0  ;;  %v1735_v37 = vpop.f32.mrb[6].mxu1  ;;  %v499_v42 = vmul.f32 1.442695, %v462_v27  ;;  %1406 = vpow2.f32 %v527_v30  ;;  %vm379_vm14 = vcmp.ne.f32.partialorder %v1717_v14, %v1717_v14 }
 0x13a   :  { %v477_v38 = vsub.f32 0.0, %v445_v32  ;;  %v432_v39 = vand.u32 2147483647, %v1733_v36  ;;  %v448_v40 = vand.u32 2147483647, %v1735_v37  ;;  %v1739_v41 = vpop.f32.mrb[7].mxu0  ;;  %1408 = vpow2.f32 %v493_v31 }
 0x13b   :  { %v531_v43 = vmul.f32 1.442695, %v478_v34  ;;  %v431_v44 = vand.u32 2147483647, %v1739_v41  ;;  %v497_v45 = vmul.f32 1.442695, %v461_v35  ;;  %1410 = vpow2.f32 %v525_v33 }
 0x13c   :  { %v464_v46 = vsub.f32 0.0, %v432_v39  ;;  %v480_v47 = vsub.f32 0.0, %v448_v40  ;;  %v1742_v48 = vpop.f32.mrb[7].mxu1  ;;  %v1744_v49 = vpop.f32.mrb[8].mxu0  ;;  %v529_v54 = vmul.f32 1.442695, %v477_v38  ;;  %1412 = vpow2.f32 %v499_v42 }
 0x13d   :  { %v463_v50 = vsub.f32 0.0, %v431_v44  ;;  %v447_v51 = vand.u32 2147483647, %v1742_v48  ;;  %v434_v52 = vand.u32 2147483647, %v1744_v49  ;;  %v1748_v53 = vpop.f32.mrb[8].mxu1  ;;  %1414 = vpow2.f32 %v531_v43  ;;  %v1760_v11 = vpop.eup %1396 }
 0x13e   :  { %2432 = vst [vmem:[#allocation12_spill] sm:$0xff] %v1748_v53  ;;  %v503_v55 = vmul.f32 1.442695, %v464_v46  ;;  %v450_v56 = vand.u32 2147483647, %v1748_v53  ;;  %v1751_v0 = vpop.f32.mrb[9].mxu0  ;;  %1416 = vpow2.f32 %v497_v45  ;;  %v1766_v19 = vpop.eup %1398 }
 0x13f   :  { %v535_v59 = vmul.f32 1.442695, %v480_v47  ;;  %v479_v60 = vsub.f32 0.0, %v447_v51  ;;  %v466_v63 = vsub.f32 0.0, %v434_v52  ;;  %2433 = vst [vmem:[#allocation13_spill] sm:$0xff] %v1751_v0  ;;  %v1753_v1 = vpop.f32.mrb[9].mxu1  ;;  %1418 = vpow2.f32 %v529_v54  ;;  %v1772_v27 = vpop.eup %1400 }
 0x140   :  { %2434 = vst [vmem:[#allocation14_spill] sm:$0xff] %v1753_v1  ;;  %v482_v2 = vsub.f32 0.0, %v450_v56  ;;  %v433_v3 = vand.u32 2147483647, %v1751_v0  ;;  %v449_v6 = vand.u32 2147483647, %v1753_v1  ;;  %1420 = vpow2.f32 %v503_v55  ;;  %v1775_v31 = vpop.eup %1402 }
 0x141   :  { %v1757_v7 = vpop.f32.mrb[10].mxu0  ;;  %v501_v8 = vmul.f32 1.442695, %v463_v50  ;;  %v533_v9 = vmul.f32 1.442695, %v479_v60  ;;  %v1762_v16 = vpop.f32.mrb[10].mxu1  ;;  %1422 = vpow2.f32 %v535_v59 }
 0x142   :  { %2435 = vst [vmem:[#allocation15_spill] sm:$0xff] %v1757_v7  ;;  %v436_v10 = vand.u32 2147483647, %v1757_v7  ;;  %v507_v12 = vmul.f32 1.442695, %v466_v63  ;;  %v465_v15 = vsub.f32 0.0, %v433_v3  ;;  %v1781_v38 = vpop.eup %1404 }
 0x143   :  { %2436 = vst [vmem:[#allocation16_spill] sm:$0xff] %v1762_v16  ;;  %v1764_v17 = vpop.f32.mrb[11].mxu0  ;;  %v481_v20 = vsub.f32 0.0, %v449_v6  ;;  %v452_v23 = vand.u32 2147483647, %v1762_v16  ;;  %v1770_v25 = vpop.f32.mrb[11].mxu1  ;;  %1424 = vpow2.f32 %v501_v8 }
 0x144   :  { %2437 = vst [vmem:[#allocation17_spill] sm:$0xff] %v1764_v17  ;;  %v435_v24 = vand.u32 2147483647, %v1764_v17  ;;  %2438 = vst [vmem:[#allocation18_spill] sm:$0xff] %v1770_v25  ;;  %v539_v28 = vmul.f32 1.442695, %v482_v2  ;;  %v1787_v44 = vpop.eup %1406  ;;  %1426 = vpow2.f32 %v533_v9 }
 0x145   :  { %v468_v29 = vsub.f32 0.0, %v436_v10  ;;  %v451_v30 = vand.u32 2147483647, %v1770_v25  ;;  %v505_v32 = vmul.f32 1.442695, %v465_v15  ;;  %v484_v33 = vsub.f32 0.0, %v452_v23  ;;  %v1790_v50 = vpop.eup %1408 }
 0x146   :  { %v1777_v34 = vpop.f32.mrb[12].mxu0  ;;  %v1779_v35 = vpop.f32.mrb[12].mxu1  ;;  %v467_v39 = vsub.f32 0.0, %v435_v24  ;;  %v537_v45 = vmul.f32 1.442695, %v481_v20  ;;  %1428 = vpow2.f32 %v507_v12 }
 0x147   :  { %2439 = vst [vmem:[#allocation19_spill] sm:$0xff] %v1777_v34  ;;  %2440 = vst [vmem:[#allocation20_spill] sm:$0xff] %v1779_v35  ;;  %v438_v40 = vand.u32 2147483647, %v1777_v34  ;;  %v454_v42 = vand.u32 2147483647, %v1779_v35  ;;  %v1796_v56 = vpop.eup %1410  ;;  %1430 = vpow2.f32 %v539_v28 }
 0x148   :  { %v1785_v43 = vpop.f32.mrb[13].mxu0  ;;  %v483_v46 = vsub.f32 0.0, %v451_v30  ;;  %v511_v51 = vmul.f32 1.442695, %v468_v29  ;;  %v1792_v54 = vpop.f32.mrb[13].mxu1  ;;  %1432 = vpow2.f32 %v505_v32  ;;  %v715_v17 = vadd.f32 1.0, %v1796_v56 }
 0x149   :  { %2441 = vst [vmem:[#allocation21_spill] sm:$0xff] %v1785_v43  ;;  %v437_v47 = vand.u32 2147483647, %v1785_v43  ;;  %v470_v52 = vsub.f32 0.0, %v438_v40  ;;  %2442 = vst [vmem:[#allocation22_spill] sm:$0xff] %v1792_v54  ;;  %v1794_v55 = vpop.f32.mrb[14].mxu0  ;;  %v1801_v3 = vpop.eup %1412  ;;  %1434 = vpow2.f32 %v537_v45 }
 0x14a   :  { %2443 = vst [vmem:[#allocation23_spill] sm:$0xff] %v1794_v55  ;;  %v543_v59 = vmul.f32 1.442695, %v484_v33  ;;  %v486_v60 = vsub.f32 0.0, %v454_v42  ;;  %v453_v63 = vand.u32 2147483647, %v1792_v54  ;;  %v1803_v9 = vpop.eup %1414  ;;  %1436 = vpow2.f32 %v511_v51 }
 0x14b   :  { %v1799_v2 = vpop.f32.mrb[14].mxu1  ;;  %v509_v6 = vmul.f32 1.442695, %v467_v39  ;;  %v469_v8 = vsub.f32 0.0, %v437_v47  ;;  %v541_v10 = vmul.f32 1.442695, %v483_v46  ;;  %v1809_v20 = vpop.eup %1416 }
 0x14c   :  { %2444 = vst [vmem:[#allocation24_spill] sm:$0xff] %v1799_v2  ;;  %v1805_v12 = vpop.f32.mrb[15].mxu0  ;;  %v1807_v15 = vpop.f32.mrb[15].mxu1  ;;  %v515_v23 = vmul.f32 1.442695, %v470_v52  ;;  %v485_v24 = vsub.f32 0.0, %v453_v63  ;;  %1438 = vpow2.f32 %v543_v59 }
 0x14d   :  { %2445 = vst [vmem:[#allocation25_spill] sm:$0xff] %v1805_v12  ;;  %2446 = vst [vmem:[#allocation26_spill] sm:$0xff] %v1807_v15  ;;  %v1811_v28 = vpop.eup %1418  ;;  %v547_v29 = vmul.f32 1.442695, %v486_v60  ;;  %v440_v30 = vand.u32 2147483647, %v1794_v55  ;;  %1440 = vpow2.f32 %v509_v6 }
 0x14e   :  { %v1814_v32 = vpop.eup %1420  ;;  %v513_v33 = vmul.f32 1.442695, %v469_v8  ;;  %v456_v39 = vand.u32 2147483647, %v1799_v2  ;;  %v439_v40 = vand.u32 2147483647, %v1805_v12  ;;  %1442 = vpow2.f32 %v541_v10 }
 0x14f   :  { %v1818_v42 = vpop.eup %1422  ;;  %v706_v46 = vadd.f32 1.0, %v1766_v19  ;;  %1444 = vpow2.f32 %v515_v23  ;;  %v545_v51 = vmul.f32 1.442695, %v485_v24  ;;  %v472_v63 = vsub.f32 0.0, %v440_v30 }
 0x150   :  { %v1822_v47 = vpop.eup %1424  ;;  %1446 = vpow2.f32 %v547_v29  ;;  %v562_v6 = vadd.f32 1.0, %v1760_v11  ;;  %v488_v45 = vsub.f32 0.0, %v456_v39  ;;  %v471_v2 = vsub.f32 0.0, %v439_v40 }
 0x151   :  { %v1826_v60 = vpop.eup %1426  ;;  %1448 = vpow2.f32 %v513_v33  ;;  %v553_v23 = vadd.f32 1.0, %v1772_v27  ;;  %v455_v52 = vand.u32 2147483647, %v1807_v15  ;;  %v709_v59 = vmul.f32 -0.5, %v1766_v19 }
 0x152   :  { %v1830_v10 = vpop.eup %1428  ;;  %1450 = vlog2.f32 %v706_v46  ;;  %v712_v8 = vand.u32 2147483647, %v1766_v19  ;;  %v580_v33 = vadd.f32 1.0, %v1781_v38  ;;  %v519_v12 = vmul.f32 1.442695, %v472_v63 }
 0x153   :  { %v1833_v24 = vpop.eup %1430  ;;  %1452 = vpow2.f32 %v545_v51  ;;  %v565_v15 = vmul.f32 -0.5, %v1760_v11  ;;  %v556_v46 = vmul.f32 -0.5, %v1772_v27  ;;  %v1849_v29 = vmul.f32 1.442695, %v488_v45 }
 0x154   :  { %v1838_v30 = vpop.eup %1432  ;;  %1454 = vlog2.f32 %v562_v6  ;;  %v1851_v54 = vmul.f32 1.442695, %v471_v2  ;;  %v697_v51 = vadd.f32 1.0, %v1775_v31  ;;  %v487_v39 = vsub.f32 0.0, %v455_v52 }
 0x155   :  { %v1843_v40 = vpop.eup %1434  ;;  %1456 = vlog2.f32 %v553_v23  ;;  %v710_v43 = vadd.f32 1.0, %v709_v59  ;;  %v583_v63 = vmul.f32 -0.5, %v1781_v38  ;;  %vm1859_vm0 = vcmp.lt.f32.partialorder %v712_v8, 0.0004427343 }
 0x156   :  { %v1847_v55 = vpop.eup %1436  ;;  %1458 = vlog2.f32 %v580_v33  ;;  %v568_v45 = vand.u32 2147483647, %v1760_v11  ;;  %v724_v2 = vadd.f32 1.0, %v1787_v44  ;;  %v566_v25 = vadd.f32 1.0, %v565_v15 }
 0x157   :  { %v1854_v35 = vpop.eup %1438  ;;  %1460 = vlog2.f32 %v697_v51  ;;  %v557_v16 = vadd.f32 1.0, %v556_v46  ;;  %v559_v52 = vand.u32 2147483647, %v1772_v27  ;;  %v700_v59 = vmul.f32 -0.5, %v1775_v31 }
 0x158   :  { %2447 = vst [vmem:[#allocation27_spill] sm:$0xff] %v1854_v35  ;;  %v1857_v6 = vpop.eup %1440  ;;  %v586_v8 = vand.u32 2147483647, %v1781_v38  ;;  %1462 = vlog2.f32 %v724_v2  ;;  %v727_v51 = vmul.f32 -0.5, %v1787_v44  ;;  %v1878_v15 = vmul.f32 1.442695, %v487_v39 }
 0x159   :  { %2448 = vst [vmem:[#allocation28_spill] sm:$0xff] %v1857_v6  ;;  %v1865_v23 = vpop.eup %1442  ;;  %1464 = vpow2.f32 %v519_v12  ;;  %v584_v46 = vadd.f32 1.0, %v583_v63  ;;  %v703_v1 = vand.u32 2147483647, %v1775_v31  ;;  %vm1886_vm3 = vcmp.lt.f32.partialorder %v568_v45, 0.0004427343 }
 0x15a   :  { %2451 = vst [vmem:[#allocation29_spill] sm:$0xff] %v1865_v23  ;;  %v1869_v33 = vpop.eup %1444  ;;  %1466 = vlog2.f32 %v715_v17  ;;  %v567_v39 = vmul.f32 %v1760_v11, %v566_v25  ;;  %v558_v63 = vmul.f32 %v1772_v27, %v557_v16  ;;  %vm1893_vm4 = vcmp.lt.f32.partialorder %v559_v52, 0.0004427343 }
 0x15b   :  { %2452 = vst [vmem:[#allocation30_spill] sm:$0xff] %v1869_v33  ;;  %v1876_v7 = vpop.eup %1446  ;;  %v711_v33 = vmul.f32 %v1766_v19, %v710_v43  ;;  %v701_v19 = vadd.f32 1.0, %v700_v59  ;;  %vm1901_vm6 = vcmp.lt.f32.partialorder %v586_v8, 0.0004427343  ;;  %v728_v45 = vadd.f32 1.0, %v727_v51 }
 0x15c   :  { %2453 = vst [vmem:[#allocation31_spill] sm:$0xff] %v1876_v7  ;;  %v1881_v23 = vpop.eup %1448  ;;  %v571_v7 = vadd.f32 1.0, %v1790_v50  ;;  %v585_v16 = vmul.f32 %v1781_v38, %v584_v46  ;;  %vm1906_vm7 = vcmp.lt.f32.partialorder %v703_v1, 0.0004427343  ;;  %v730_v27 = vand.u32 2147483647, %v1787_v44 }
 0x15d   :  { %2454 = vst [vmem:[#allocation32_spill] sm:$0xff] %v1881_v23  ;;  %v1451_v12 = vpop.eup %1450  ;;  %v718_v52 = vmul.f32 -0.5, %v1796_v56  ;;  %v598_v38 = vadd.f32 1.0, %v1801_v3  ;;  %v2464_v51 = vmax.f32 %v1699_v58, 0.0  ;;  %v702_v53 = vmul.f32 %v1775_v31, %v701_v19 }
 0x15e   :  { %v1897_v43 = vpop.eup %1452  ;;  %v708_v23 = vmul.f32 0.6931472, %v1451_v12  ;;  %1468 = vlog2.f32 %v571_v7  ;;  %v574_v7 = vmul.f32 -0.5, %v1790_v50  ;;  %v721_v0 = vand.u32 2147483647, %v1796_v56 }
 0x15f   :  { %2459 = vst [vmem:[#allocation33_spill] sm:$0xff] %v1897_v43  ;;  %v1455_v11 = vpop.eup %1454  ;;  %1470 = vlog2.f32 %v598_v38  ;;  %v2465_v31 = vmax.f32 %v1697_v57, 0.0  ;;  %vm731_vm11 = vcmp.lt.f32.partialorder %v730_v27, 0.0004427343  ;;  %v589_v25 = vadd.f32 1.0, %v1809_v20 }
 0x160   :  { %v1457_v59 = vpop.eup %1456  ;;  %v714_v8 = vsel %vm1859_vm0, %v711_v33, %v708_v23  ;;  %v564_v12 = vmul.f32 0.6931472, %v1455_v11  ;;  %v729_v33 = vmul.f32 %v1787_v44, %v728_v45  ;;  %v719_v44 = vadd.f32 1.0, %v718_v52 }
 0x161   :  { %v1459_v1 = vpop.eup %1458  ;;  %v858_v46 = vadd.f32 %v714_v8, %v2464_v51  ;;  %v555_v43 = vmul.f32 0.6931472, %v1457_v59  ;;  %v575_v45 = vadd.f32 1.0, %v574_v7  ;;  %vm1952_vm12 = vcmp.lt.f32.partialorder %v721_v0, 0.0004427343 }
 0x162   :  { %v1461_v6 = vpop.eup %1460  ;;  %v570_v34 = vsel %vm1886_vm3, %v567_v39, %v564_v12  ;;  %v582_v23 = vmul.f32 0.6931472, %v1459_v1  ;;  %v601_v12 = vmul.f32 -0.5, %v1801_v3  ;;  %v577_v51 = vand.u32 2147483647, %v1790_v50 }
 0x163   :  { %v890_v11 = vsel %vm378_vm1, %v1699_v58, %v858_v46  ;;  %v842_v19 = vadd.f32 %v570_v34, %v2465_v31  ;;  %v561_v59 = vsel %vm1893_vm4, %v558_v63, %v555_v43  ;;  %v699_v2 = vmul.f32 0.6931472, %v1461_v6  ;;  %v1463_v39 = vpop.eup %1462 }
 0x164   :  { %1024 = vperm.xlu1 %1395, %v890_v11   ;;  %v588_v8 = vsel %vm1901_vm6, %v585_v16, %v582_v23  ;;  %v1940_v38 = vpop.eup %1464  ;;  %v2466_v6 = vmax.f32 %v1703_v61, 0.0  ;;  %v2467_v43 = vmax.f32 %v1709_v4, 0.0  ;;  %v726_v16 = vmul.f32 0.6931472, %v1463_v39 }
 0x165   :  { %v874_v35 = vsel %vm362_vm2, %v1697_v57, %v842_v19  ;;  %v1467_v1 = vpop.eup %1466  ;;  %v705_v52 = vsel %vm1906_vm7, %v702_v53, %v699_v2  ;;  %v2470_v0 = vmax.f32 %v1711_v5, 0.0  ;;  %v720_v11 = vmul.f32 %v1796_v56, %v719_v44 }
 0x166   :  { %v841_v63 = vadd.f32 %v561_v59, %v2466_v6  ;;  %v844_v17 = vadd.f32 %v588_v8, %v2467_v43  ;;  %944 = vperm.xlu0 %1394, %v874_v35   ;;  %v732_v34 = vsel %vm731_vm11, %v729_v33, %v726_v16  ;;  %v717_v23 = vmul.f32 0.6931472, %v1467_v1 }
 0x167   :  { %v860_v27 = vadd.f32 %v732_v34, %v2470_v0  ;;  %v576_v31 = vmul.f32 %v1790_v50, %v575_v45  ;;  %v602_v19 = vadd.f32 1.0, %v601_v12  ;;  %v2471_v59 = vmax.f32 %v1705_v62, 0.0 }
 0x168   :  { %v876_v46 = vsel %vm364_vm5, %v1709_v4, %v844_v17  ;;  %v1469_v53 = vpop.eup %1468  ;;  %v873_v33 = vsel %vm361_vm8, %v1703_v61, %v841_v63  ;;  %1472 = vlog2.f32 %v589_v25  ;;  %v723_v8 = vsel %vm1952_vm12, %v720_v11, %v717_v23 }
 0x169   :  { %954 = vperm.xlu1 %1395, %v876_v46   ;;  %v857_v2 = vadd.f32 %v705_v52, %v2471_v59  ;;  %v573_v39 = vmul.f32 0.6931472, %v1469_v53  ;;  %v331_v35 = vmax.f32 %v1715_v13, 0.0  ;;  %vm578_vm15 = vcmp.lt.f32.partialorder %v577_v51, 0.0004427343  ;;  %v1471_v6 = vpop.eup %1470 }
 0x16a   :  { %939 = vperm.xlu0 %1394, %v873_v33   ;;  %v604_v50 = vand.u32 2147483647, %v1801_v3  ;;  %v892_v56 = vsel %vm380_vm9, %v1711_v5, %v860_v27  ;;  %v347_v44 = vmax.f32 %v1717_v14, 0.0  ;;  %v742_v12 = vadd.f32 1.0, %v1803_v9 }
 0x16b   :  { %v579_v45 = vsel %vm578_vm15, %v576_v31, %v573_v39  ;;  %1474 = vpow2.f32 %v1849_v29  ;;  %v603_v43 = vmul.f32 %v1801_v3, %v602_v19  ;;  %v592_v17 = vmul.f32 -0.5, %v1809_v20 }
 0x16c   :  { %v843_v63 = vadd.f32 %v579_v45, %v331_v35  ;;  %v889_v16 = vsel %vm377_vm10, %v1705_v62, %v857_v2  ;;  %v859_v1 = vadd.f32 %v723_v8, %v347_v44  ;;  %v600_v52 = vmul.f32 0.6931472, %v1471_v6 }
 0x16d   :  { %1034 = vperm.xlu1 %1395, %v892_v56   ;;  %1476 = vlog2.f32 %v742_v12  ;;  %v334_v7 = vmax.f32 %v1721_v18, 0.0  ;;  %vm605_vm0 = vcmp.lt.f32.partialorder %v604_v50, 0.0004427343  ;;  %v733_v29 = vadd.f32 1.0, %v1811_v28 }
 0x16e   :  { %1478 = vpow2.f32 %v1851_v54  ;;  %1019 = vperm.xlu0 %1394, %v889_v16   ;;  %v875_v3 = vsel %vm363_vm13, %v1715_v13, %v843_v63  ;;  %v606_v51 = vsel %vm605_vm0, %v603_v43, %v600_v52  ;;  %v745_v46 = vmul.f32 -0.5, %v1803_v9 }
 0x16f   :  { %1480 = vpow2.f32 %v1878_v15  ;;  %v846_v34 = vadd.f32 %v606_v51, %v334_v7  ;;  %v593_v23 = vadd.f32 1.0, %v592_v17  ;;  %v595_v54 = vand.u32 2147483647, %v1809_v20 }
 0x170   :  { %1482 = vlog2.f32 %v733_v29  ;;  %v891_v25 = vsel %vm379_vm14, %v1717_v14, %v859_v1  ;;  %vm366_vm1 = vcmp.ne.f32.partialorder %v1721_v18, %v1721_v18  ;;  %v333_v15 = vmax.f32 %v1726_v22, 0.0 }
 0x171   :  { %949 = vperm.xlu1 %1395, %v875_v3   ;;  %v616_v53 = vadd.f32 1.0, %v1814_v32  ;;  %vm365_vm2 = vcmp.ne.f32.partialorder %v1726_v22, %v1726_v22  ;;  %v350_v0 = vmax.f32 %v1724_v21, 0.0  ;;  %v748_v27 = vand.u32 2147483647, %v1803_v9 }
 0x172   :  { %1029 = vperm.xlu0 %1394, %v891_v25   ;;  %v736_v11 = vmul.f32 -0.5, %v1811_v28  ;;  %v1473_v31 = vpop.eup %1472  ;;  %v878_v19 = vsel %vm366_vm1, %v1721_v18, %v846_v34  ;;  %v746_v33 = vadd.f32 1.0, %v745_v46  ;;  %v607_v59 = vadd.f32 1.0, %v1822_v47 }
 0x173   :  { %1484 = vlog2.f32 %v616_v53  ;;  %v591_v2 = vmul.f32 0.6931472, %v1473_v31  ;;  %v594_v39 = vmul.f32 %v1809_v20, %v593_v23  ;;  %vm596_vm3 = vcmp.lt.f32.partialorder %v595_v54, 0.0004427343 }
 0x174   :  { %v619_v8 = vmul.f32 -0.5, %v1814_v32  ;;  %vm382_vm4 = vcmp.ne.f32.partialorder %v1724_v21, %v1724_v21  ;;  %v349_v35 = vmax.f32 %v1728_v26, 0.0  ;;  %v739_v50 = vand.u32 2147483647, %v1811_v28 }
 0x175   :  { %964 = vperm.xlu1 %1395, %v878_v19   ;;  %1486 = vlog2.f32 %v607_v59  ;;  %v2024_v56 = vpop.eup %1474  ;;  %v597_v44 = vsel %vm596_vm3, %v594_v39, %v591_v2  ;;  %v737_v45 = vadd.f32 1.0, %v736_v11  ;;  %v610_v12 = vmul.f32 -0.5, %v1822_v47 }
 0x176   :  { %v760_v6 = vadd.f32 1.0, %v1818_v42  ;;  %v845_v63 = vadd.f32 %v597_v44, %v333_v15  ;;  %v747_v43 = vmul.f32 %v1803_v9, %v746_v33  ;;  %vm2029_vm5 = vcmp.lt.f32.partialorder %v748_v27, 0.0004427343 }
 0x177   :  { %v1477_v20 = vpop.eup %1476  ;;  %vm381_vm6 = vcmp.ne.f32.partialorder %v1728_v26, %v1728_v26  ;;  %v620_v52 = vadd.f32 1.0, %v619_v8  ;;  %v622_v7 = vand.u32 2147483647, %v1814_v32  ;;  %v336_v3 = vmax.f32 %v1733_v36, 0.0 }
 0x178   :  { %v2035_v16 = vpop.eup %1478  ;;  %v744_v1 = vmul.f32 0.6931472, %v1477_v20  ;;  %1488 = vlog2.f32 %v760_v6  ;;  %v877_v9 = vsel %vm365_vm2, %v1726_v22, %v845_v63  ;;  %v763_v51 = vmul.f32 -0.5, %v1818_v42 }
 0x179   :  { %v2038_v29 = vpop.eup %1480  ;;  %v751_v46 = vadd.f32 1.0, %v1826_v60  ;;  %959 = vperm.xlu0 %1394, %v877_v9   ;;  %v738_v54 = vmul.f32 %v1811_v28, %v737_v45  ;;  %vm2050_vm7 = vcmp.lt.f32.partialorder %v739_v50, 0.0004427343  ;;  %vm368_vm8 = vcmp.ne.f32.partialorder %v1733_v36, %v1733_v36 }
 0x17a   :  { %v1483_v34 = vpop.eup %1482  ;;  %v750_v23 = vsel %vm2029_vm5, %v747_v43, %v744_v1  ;;  %v611_v15 = vadd.f32 1.0, %v610_v12  ;;  %v754_v11 = vmul.f32 -0.5, %v1826_v60  ;;  %v621_v31 = vmul.f32 %v1814_v32, %v620_v52 }
 0x17b   :  { %v862_v53 = vadd.f32 %v750_v23, %v350_v0  ;;  %v735_v27 = vmul.f32 0.6931472, %v1483_v34  ;;  %1490 = vlog2.f32 %v751_v46  ;;  %vm2058_vm9 = vcmp.lt.f32.partialorder %v622_v7, 0.0004427343 }
 0x17c   :  { %v613_v28 = vand.u32 2147483647, %v1822_v47  ;;  %v634_v33 = vadd.f32 1.0, %v1830_v10  ;;  %v764_v39 = vadd.f32 1.0, %v763_v51  ;;  %v766_v32 = vand.u32 2147483647, %v1818_v42 }
 0x17d   :  { %v1485_v59 = vpop.eup %1484  ;;  %v894_v0 = vsel %vm382_vm4, %v1724_v21, %v862_v53  ;;  %v741_v2 = vsel %vm2050_vm7, %v738_v54, %v735_v27  ;;  %v637_v44 = vmul.f32 -0.5, %v1830_v10  ;;  %v335_v12 = vmax.f32 %v1739_v41, 0.0 }
 0x17e   :  { %1044 = vperm.xlu1 %1395, %v894_v0   ;;  %v861_v8 = vadd.f32 %v741_v2, %v349_v35  ;;  %v618_v50 = vmul.f32 0.6931472, %v1485_v59  ;;  %1492 = vlog2.f32 %v634_v33  ;;  %vm367_vm10 = vcmp.ne.f32.partialorder %v1739_v41, %v1739_v41 }
 0x17f   :  { %v1487_v45 = vpop.eup %1486  ;;  %v612_v6 = vmul.f32 %v1822_v47, %v611_v15  ;;  %v755_v20 = vadd.f32 1.0, %v754_v11  ;;  %v625_v17 = vadd.f32 1.0, %v1838_v30  ;;  %vm614_vm11 = vcmp.lt.f32.partialorder %v613_v28, 0.0004427343 }
 0x180   :  { %v893_v63 = vsel %vm381_vm6, %v1728_v26, %v861_v8  ;;  %v624_v35 = vsel %vm2058_vm9, %v621_v31, %v618_v50  ;;  %v609_v43 = vmul.f32 0.6931472, %v1487_v45  ;;  %v765_v52 = vmul.f32 %v1818_v42, %v764_v39 }
 0x181   :  { %1039 = vperm.xlu0 %1394, %v893_v63   ;;  %v848_v1 = vadd.f32 %v624_v35, %v336_v3  ;;  %v757_v7 = vand.u32 2147483647, %v1826_v60  ;;  %vm2085_vm12 = vcmp.lt.f32.partialorder %v766_v32, 0.0004427343  ;;  %v638_v46 = vadd.f32 1.0, %v637_v44 }
 0x182   :  { %v1489_v47 = vpop.eup %1488  ;;  %v615_v9 = vsel %vm614_vm11, %v612_v6, %v609_v43  ;;  %1494 = vlog2.f32 %v625_v17  ;;  %v628_v54 = vmul.f32 -0.5, %v1838_v30  ;;  %v352_v42 = vmax.f32 %v1735_v37, 0.0 }
 0x183   :  { %v880_v34 = vsel %vm368_vm8, %v1733_v36, %v848_v1  ;;  %v847_v23 = vadd.f32 %v615_v9, %v335_v12  ;;  %v762_v3 = vmul.f32 0.6931472, %v1489_v47  ;;  %v756_v25 = vmul.f32 %v1826_v60, %v755_v20 }
 0x184   :  { %974 = vperm.xlu1 %1395, %v880_v34   ;;  %v640_v15 = vand.u32 2147483647, %v1830_v10  ;;  %v778_v53 = vadd.f32 1.0, %v1833_v24  ;;  %vm384_vm13 = vcmp.ne.f32.partialorder %v1735_v37, %v1735_v37  ;;  %vm2106_vm14 = vcmp.lt.f32.partialorder %v757_v7, 0.0004427343  ;;  %v2486_v34 = vld [vmem:[#allocation28_spill] sm:$0xff] }
 0x185   :  { %v1491_v27 = vpop.eup %1490  ;;  %v879_v11 = vsel %vm367_vm10, %v1739_v41, %v847_v23  ;;  %v768_v31 = vsel %vm2085_vm12, %v765_v52, %v762_v3  ;;  %v351_v28 = vmax.f32 %v1742_v48, 0.0  ;;  %v639_v59 = vmul.f32 %v1830_v10, %v638_v46  ;;  %v2487_v3 = vld [vmem:[#allocation13_spill] sm:$0xff] }
 0x186   :  { %969 = vperm.xlu0 %1394, %v879_v11   ;;  %v864_v60 = vadd.f32 %v768_v31, %v352_v42  ;;  %v753_v33 = vmul.f32 0.6931472, %v1491_v27  ;;  %1496 = vlog2.f32 %v778_v53  ;;  %v629_v0 = vadd.f32 1.0, %v628_v54  ;;  %v2488_v31 = vld [vmem:[#allocation12_spill] sm:$0xff] }
 0x187   :  { %v781_v2 = vmul.f32 -0.5, %v1833_v24  ;;  %v769_v39 = vadd.f32 1.0, %v1843_v40  ;;  %vm2117_vm15 = vcmp.lt.f32.partialorder %v640_v15, 0.0004427343  ;;  %v631_v45 = vand.u32 2147483647, %v1838_v30 }
 0x188   :  { %v1493_v32 = vpop.eup %1492  ;;  %v896_v8 = vsel %vm384_vm13, %v1735_v37, %v864_v60  ;;  %v759_v50 = vsel %vm2106_vm14, %v756_v25, %v753_v33  ;;  %vm383_vm0 = vcmp.ne.f32.partialorder %v1742_v48, %v1742_v48  ;;  %v338_v6 = vmax.f32 %v1744_v49, 0.0 }
 0x189   :  { %1054 = vperm.xlu1 %1395, %v896_v8   ;;  %v863_v12 = vadd.f32 %v759_v50, %v351_v28  ;;  %v636_v10 = vmul.f32 0.6931472, %v1493_v32  ;;  %1498 = vlog2.f32 %v769_v39  ;;  %v772_v20 = vmul.f32 -0.5, %v1843_v40 }
 0x18a   :  { %v652_v63 = vadd.f32 1.0, %v1847_v55  ;;  %v630_v17 = vmul.f32 %v1838_v30, %v629_v0  ;;  %v782_v1 = vadd.f32 1.0, %v781_v2  ;;  %vm2131_vm1 = vcmp.lt.f32.partialorder %v631_v45, 0.0004427343  ;;  %v2491_v2 = vld [vmem:[#allocation27_spill] sm:$0xff] }
 0x18b   :  { %v895_v35 = vsel %vm383_vm0, %v1742_v48, %v863_v12  ;;  %v642_v43 = vsel %vm2117_vm15, %v639_v59, %v636_v10  ;;  %v784_v9 = vand.u32 2147483647, %v1833_v24  ;;  %vm370_vm2 = vcmp.ne.f32.partialorder %v1744_v49, %v1744_v49 }
 0x18c   :  { %v1495_v52 = vpop.eup %1494  ;;  %1049 = vperm.xlu0 %1394, %v895_v35   ;;  %v850_v7 = vadd.f32 %v642_v43, %v338_v6  ;;  %1500 = vlog2.f32 %v652_v63  ;;  %v655_v46 = vmul.f32 -0.5, %v1847_v55  ;;  %v643_v23 = vadd.f32 1.0, %v2486_v34  ;;  %v2494_v63 = vld [vmem:[#allocation29_spill] sm:$0xff] }
 0x18d   :  { %v627_v51 = vmul.f32 0.6931472, %v1495_v52  ;;  %v337_v54 = vmax.f32 %v2487_v3, 0.0  ;;  %vm369_vm3 = vcmp.ne.f32.partialorder %v2487_v3, %v2487_v3  ;;  %v773_v42 = vadd.f32 1.0, %v772_v20 }
 0x18e   :  { %v882_v30 = vsel %vm370_vm2, %v1744_v49, %v850_v7  ;;  %v783_v15 = vmul.f32 %v1833_v24, %v782_v1  ;;  %v775_v53 = vand.u32 2147483647, %v1843_v40  ;;  %1502 = vlog2.f32 %v643_v23  ;;  %v2498_v23 = vld [vmem:[#allocation30_spill] sm:$0xff]  ;;  %v2507_v1 = vld [vmem:[#allocation31_spill] sm:$0xff] }
 0x18f   :  { %984 = vperm.xlu1 %1395, %v882_v30   ;;  %v633_v25 = vsel %vm2131_vm1, %v630_v17, %v627_v51  ;;  %v354_v19 = vmax.f32 %v2488_v31, 0.0  ;;  %vm2149_vm4 = vcmp.lt.f32.partialorder %v784_v9, 0.0004427343  ;;  %v646_v28 = vmul.f32 -0.5, %v2486_v34 }
 0x190   :  { %v1497_v27 = vpop.eup %1496  ;;  %v849_v11 = vadd.f32 %v633_v25, %v337_v54  ;;  %v656_v59 = vadd.f32 1.0, %v655_v46  ;;  %v658_v0 = vand.u32 2147483647, %v1847_v55  ;;  %v796_v39 = vadd.f32 1.0, %v2491_v2  ;;  %v2499_v54 = vld [vmem:[#allocation15_spill] sm:$0xff] }
 0x191   :  { %v780_v33 = vmul.f32 0.6931472, %v1497_v27  ;;  %vm386_vm5 = vcmp.ne.f32.partialorder %v2488_v31, %v2488_v31  ;;  %v774_v32 = vmul.f32 %v1843_v40, %v773_v42  ;;  %v799_v8 = vmul.f32 -0.5, %v2491_v2  ;;  %v2495_v40 = vld [vmem:[#allocation14_spill] sm:$0xff] }
 0x192   :  { %v881_v24 = vsel %vm369_vm3, %v2487_v3, %v849_v11  ;;  %vm2166_vm6 = vcmp.lt.f32.partialorder %v775_v53, 0.0004427343  ;;  %v649_v12 = vand.u32 2147483647, %v2486_v34  ;;  %1504 = vlog2.f32 %v796_v39 }
 0x193   :  { %v1499_v50 = vpop.eup %1498  ;;  %979 = vperm.xlu0 %1394, %v881_v24   ;;  %v786_v44 = vsel %vm2149_vm4, %v783_v15, %v780_v33  ;;  %v647_v20 = vadd.f32 1.0, %v646_v28  ;;  %v787_v35 = vadd.f32 1.0, %v2494_v63  ;;  %v353_v43 = vmax.f32 %v2495_v40, 0.0  ;;  %v2502_v28 = vld [vmem:[#allocation17_spill] sm:$0xff]  ;;  %v2503_v24 = vld [vmem:[#allocation32_spill] sm:$0xff] }
 0x194   :  { %v866_v10 = vadd.f32 %v786_v44, %v354_v19  ;;  %v771_v6 = vmul.f32 0.6931472, %v1499_v50  ;;  %vm385_vm7 = vcmp.ne.f32.partialorder %v2495_v40, %v2495_v40  ;;  %v657_v17 = vmul.f32 %v1847_v55, %v656_v59 }
 0x195   :  { %vm2176_vm8 = vcmp.lt.f32.partialorder %v658_v0, 0.0004427343  ;;  %v800_v9 = vadd.f32 1.0, %v799_v8  ;;  %1506 = vlog2.f32 %v787_v35  ;;  %v790_v55 = vmul.f32 -0.5, %v2494_v63 }
 0x196   :  { %v1501_v52 = vpop.eup %1500  ;;  %v898_v7 = vsel %vm386_vm5, %v2488_v31, %v866_v10  ;;  %v777_v47 = vsel %vm2166_vm6, %v774_v32, %v771_v6  ;;  %v670_v30 = vadd.f32 1.0, %v2498_v23  ;;  %v340_v42 = vmax.f32 %v2499_v54, 0.0  ;;  %v2504_v6 = vld [vmem:[#allocation16_spill] sm:$0xff] }
 0x197   :  { %1064 = vperm.xlu1 %1395, %v898_v7   ;;  %v865_v51 = vadd.f32 %v777_v47, %v353_v43  ;;  %v654_v46 = vmul.f32 0.6931472, %v1501_v52  ;;  %vm372_vm9 = vcmp.ne.f32.partialorder %v2499_v54, %v2499_v54  ;;  %v648_v25 = vmul.f32 %v2486_v34, %v647_v20  ;;  %v2508_v47 = vld [vmem:[#allocation18_spill] sm:$0xff] }
 0x198   :  { %vm2192_vm10 = vcmp.lt.f32.partialorder %v649_v12, 0.0004427343  ;;  %v1503_v53 = vpop.eup %1502  ;;  %v802_v19 = vand.u32 2147483647, %v2491_v2  ;;  %1508 = vlog2.f32 %v670_v30  ;;  %v339_v34 = vmax.f32 %v2502_v28, 0.0 }
 0x199   :  { %v897_v27 = vsel %vm385_vm7, %v2495_v40, %v865_v51  ;;  %v660_v11 = vsel %vm2176_vm8, %v657_v17, %v654_v46  ;;  %v645_v33 = vmul.f32 0.6931472, %v1503_v53  ;;  %v673_v59 = vmul.f32 -0.5, %v2498_v23 }
 0x19a   :  { %1059 = vperm.xlu0 %1394, %v897_v27   ;;  %v852_v60 = vadd.f32 %v660_v11, %v340_v42  ;;  %vm371_vm11 = vcmp.ne.f32.partialorder %v2502_v28, %v2502_v28  ;;  %v801_v0 = vmul.f32 %v2491_v2, %v800_v9  ;;  %v791_v39 = vadd.f32 1.0, %v790_v55  ;;  %v2511_v27 = vld [vmem:[#allocation33_spill] sm:$0xff] }
 0x19b   :  { %v661_v32 = vadd.f32 1.0, %v2503_v24  ;;  %v651_v50 = vsel %vm2192_vm10, %v648_v25, %v645_v33  ;;  %v793_v44 = vand.u32 2147483647, %v2494_v63  ;;  %v664_v45 = vmul.f32 -0.5, %v2503_v24 }
 0x19c   :  { %v884_v8 = vsel %vm372_vm9, %v2499_v54, %v852_v60  ;;  %v1505_v12 = vpop.eup %1504  ;;  %v851_v10 = vadd.f32 %v651_v50, %v339_v34  ;;  %v356_v2 = vmax.f32 %v2504_v6, 0.0  ;;  %vm2218_vm12 = vcmp.lt.f32.partialorder %v802_v19, 0.0004427343 }
 0x19d   :  { %994 = vperm.xlu1 %1395, %v884_v8   ;;  %1510 = vlog2.f32 %v661_v32  ;;  %v798_v35 = vmul.f32 0.6931472, %v1505_v12  ;;  %v674_v43 = vadd.f32 1.0, %v673_v59  ;;  %v676_v17 = vand.u32 2147483647, %v2498_v23 }
 0x19e   :  { %v814_v52 = vadd.f32 1.0, %v2507_v1  ;;  %v883_v7 = vsel %vm371_vm11, %v2502_v28, %v851_v10  ;;  %vm388_vm13 = vcmp.ne.f32.partialorder %v2504_v6, %v2504_v6  ;;  %v355_v9 = vmax.f32 %v2508_v47, 0.0 }
 0x19f   :  { %v792_v51 = vmul.f32 %v2494_v63, %v791_v39  ;;  %v1507_v46 = vpop.eup %1506  ;;  %989 = vperm.xlu0 %1394, %v883_v7   ;;  %v804_v55 = vsel %vm2218_vm12, %v801_v0, %v798_v35  ;;  %vm2234_vm14 = vcmp.lt.f32.partialorder %v793_v44, 0.0004427343  ;;  %v665_v42 = vadd.f32 1.0, %v664_v45  ;;  %v2512_v63 = vld [vmem:[#allocation19_spill] sm:$0xff]  ;;  %v2517_v7 = vld [vmem:[#allocation21_spill] sm:$0xff] }
 0x1a0   :  { %1512 = vlog2.f32 %v814_v52  ;;  %v868_v25 = vadd.f32 %v804_v55, %v356_v2  ;;  %v789_v15 = vmul.f32 0.6931472, %v1507_v46  ;;  %v817_v53 = vmul.f32 -0.5, %v2507_v1 }
 0x1a1   :  { %v805_v11 = vadd.f32 1.0, %v2511_v27  ;;  %vm387_vm15 = vcmp.ne.f32.partialorder %v2508_v47, %v2508_v47  ;;  %v342_v19 = vmax.f32 %v2512_v63, 0.0  ;;  %v675_v60 = vmul.f32 %v2498_v23, %v674_v43 }
 0x1a2   :  { %vm2244_vm0 = vcmp.lt.f32.partialorder %v676_v17, 0.0004427343  ;;  %v1509_v33 = vpop.eup %1508  ;;  %v900_v59 = vsel %vm388_vm13, %v2504_v6, %v868_v25  ;;  %v795_v0 = vsel %vm2234_vm14, %v792_v51, %v789_v15  ;;  %v667_v39 = vand.u32 2147483647, %v2503_v24 }
 0x1a3   :  { %1514 = vlog2.f32 %v805_v11  ;;  %1074 = vperm.xlu1 %1395, %v900_v59   ;;  %v867_v32 = vadd.f32 %v795_v0, %v355_v9  ;;  %v672_v8 = vmul.f32 0.6931472, %v1509_v33  ;;  %v808_v23 = vmul.f32 -0.5, %v2511_v27 }
 0x1a4   :  { %v688_v50 = vadd.f32 1.0, %v1940_v38  ;;  %vm374_vm1 = vcmp.ne.f32.partialorder %v2512_v63, %v2512_v63  ;;  %v666_v44 = vmul.f32 %v2503_v24, %v665_v42  ;;  %v818_v45 = vadd.f32 1.0, %v817_v53  ;;  %v2518_v53 = vld [vmem:[#allocation20_spill] sm:$0xff] }
 0x1a5   :  { %v820_v12 = vand.u32 2147483647, %v2507_v1  ;;  %v899_v10 = vsel %vm387_vm15, %v2508_v47, %v867_v32  ;;  %v678_v2 = vsel %vm2244_vm0, %v675_v60, %v672_v8  ;;  %v679_v20 = vadd.f32 1.0, %v2035_v16 }
 0x1a6   :  { %1516 = vlog2.f32 %v688_v50  ;;  %1069 = vperm.xlu0 %1394, %v899_v10   ;;  %v854_v43 = vadd.f32 %v678_v2, %v342_v19  ;;  %vm2268_vm2 = vcmp.lt.f32.partialorder %v667_v39, 0.0004427343  ;;  %v811_v24 = vand.u32 2147483647, %v2511_v27  ;;  %v2523_v2 = vld [vmem:[#allocation22_spill] sm:$0xff] }
 0x1a7   :  { %v1511_v35 = vpop.eup %1510  ;;  %v691_v52 = vmul.f32 -0.5, %v1940_v38  ;;  %v341_v9 = vmax.f32 %v2517_v7, 0.0  ;;  %v809_v46 = vadd.f32 1.0, %v808_v23  ;;  %1518 = vlog2.f32 %v679_v20 }
 0x1a8   :  { %v663_v51 = vmul.f32 0.6931472, %v1511_v35  ;;  %v886_v55 = vsel %vm374_vm1, %v2512_v63, %v854_v43  ;;  %vm373_vm3 = vcmp.ne.f32.partialorder %v2517_v7, %v2517_v7  ;;  %v819_v30 = vmul.f32 %v2507_v1, %v818_v45 }
 0x1a9   :  { %v682_v42 = vmul.f32 -0.5, %v2035_v16  ;;  %1004 = vperm.xlu1 %1395, %v886_v55   ;;  %v358_v11 = vmax.f32 %v2518_v53, 0.0  ;;  %vm2286_vm4 = vcmp.lt.f32.partialorder %v820_v12, 0.0004427343  ;;  %v832_v60 = vadd.f32 1.0, %v2024_v56 }
 0x1aa   :  { %v1513_v25 = vpop.eup %1512  ;;  %v669_v15 = vsel %vm2268_vm2, %v666_v44, %v663_v51  ;;  %vm2291_vm5 = vcmp.lt.f32.partialorder %v811_v24, 0.0004427343  ;;  %v692_v1 = vadd.f32 1.0, %v691_v52  ;;  %v810_v0 = vmul.f32 %v2511_v27, %v809_v46 }
 0x1ab   :  { %v853_v34 = vadd.f32 %v669_v15, %v341_v9  ;;  %v816_v33 = vmul.f32 0.6931472, %v1513_v25  ;;  %v694_v39 = vand.u32 2147483647, %v1940_v38  ;;  %1520 = vlog2.f32 %v832_v60 }
 0x1ac   :  { %v823_v32 = vadd.f32 1.0, %v2038_v29  ;;  %v683_v44 = vadd.f32 1.0, %v682_v42  ;;  %v835_v45 = vmul.f32 -0.5, %v2024_v56  ;;  %v685_v10 = vand.u32 2147483647, %v2035_v16 }
 0x1ad   :  { %v1515_v8 = vpop.eup %1514  ;;  %v885_v23 = vsel %vm373_vm3, %v2517_v7, %v853_v34  ;;  %v822_v50 = vsel %vm2286_vm4, %v819_v30, %v816_v33  ;;  %vm390_vm6 = vcmp.ne.f32.partialorder %v2518_v53, %v2518_v53  ;;  %v357_v20 = vmax.f32 %v2523_v2, 0.0  ;;  %v2527_v33 = vld [vmem:[#allocation25_spill] sm:$0xff] }
 0x1ae   :  { %999 = vperm.xlu0 %1394, %v885_v23   ;;  %v870_v12 = vadd.f32 %v822_v50, %v358_v11  ;;  %v807_v27 = vmul.f32 0.6931472, %v1515_v8  ;;  %1522 = vlog2.f32 %v823_v32  ;;  %v693_v35 = vmul.f32 %v1940_v38, %v692_v1  ;;  %v2526_v38 = vld [vmem:[#allocation23_spill] sm:$0xff]  ;;  %v2528_v50 = vld [vmem:[#allocation24_spill] sm:$0xff] }
 0x1af   :  { %v826_v43 = vmul.f32 -0.5, %v2038_v29  ;;  %vm2314_vm7 = vcmp.lt.f32.partialorder %v694_v39, 0.0004427343  ;;  %v684_v55 = vmul.f32 %v2035_v16, %v683_v44  ;;  %v836_v30 = vadd.f32 1.0, %v835_v45 }
 0x1b0   :  { %v1517_v17 = vpop.eup %1516  ;;  %v902_v24 = vsel %vm390_vm6, %v2518_v53, %v870_v12  ;;  %v813_v52 = vsel %vm2291_vm5, %v810_v0, %v807_v27  ;;  %vm389_vm8 = vcmp.ne.f32.partialorder %v2523_v2, %v2523_v2  ;;  %v344_v25 = vmax.f32 %v2526_v38, 0.0 }
 0x1b1   :  { %1084 = vperm.xlu1 %1395, %v902_v24   ;;  %v869_v51 = vadd.f32 %v813_v52, %v357_v20  ;;  %v690_v46 = vmul.f32 0.6931472, %v1517_v17  ;;  %v1519_v42 = vpop.eup %1518  ;;  %vm686_vm9 = vcmp.lt.f32.partialorder %v685_v10, 0.0004427343  ;;  %v838_v15 = vand.u32 2147483647, %v2024_v56 }
 0x1b2   :  { %v681_v60 = vmul.f32 0.6931472, %v1519_v42  ;;  %v827_v34 = vadd.f32 1.0, %v826_v43  ;;  %v343_v59 = vmax.f32 %v2527_v33, 0.0  ;;  %v829_v1 = vand.u32 2147483647, %v2038_v29 }
 0x1b3   :  { %v901_v11 = vsel %vm389_vm8, %v2523_v2, %v869_v51  ;;  %v696_v19 = vsel %vm2314_vm7, %v693_v35, %v690_v46  ;;  %vm376_vm10 = vcmp.ne.f32.partialorder %v2526_v38, %v2526_v38  ;;  %v837_v39 = vmul.f32 %v2024_v56, %v836_v30  ;;  %v2529_v10 = vld [vmem:[#allocation26_spill] sm:$0xff]  ;;  %v922_v51 = vld [vmem:[#allocation7 + $0x88] sm:$0xff] }
 0x1b4   :  { %1079 = vperm.xlu0 %1394, %v901_v11   ;;  %v856_v16 = vadd.f32 %v696_v19, %v344_v25  ;;  %v687_v0 = vsel %vm686_vm9, %v684_v55, %v681_v60  ;;  %v360_v44 = vmax.f32 %v2528_v50, 0.0  ;;  %vm839_vm11 = vcmp.lt.f32.partialorder %v838_v15, 0.0004427343  ;;  %v906_v55 = vld [vmem:[#allocation7 + $0x8] sm:$0xff]  ;;  %v908_v25 = vld [vmem:[#allocation7 + $0x18] sm:$0xff]  ;;  %v905_v19 = vld [vmem:[#allocation7] sm:$0xff] }
 0x1b5   :  { %v1521_v32 = vpop.eup %1520  ;;  %v855_v23 = vadd.f32 %v687_v0, %v343_v59  ;;  %vm375_vm12 = vcmp.ne.f32.partialorder %v2527_v33, %v2527_v33  ;;  %v828_v12 = vmul.f32 %v2038_v29, %v827_v34  ;;  %v359_v20 = vmax.f32 %v2529_v10, 0.0 }
 0x1b6   :  { %v888_v8 = vsel %vm376_vm10, %v2526_v38, %v856_v16  ;;  %v834_v45 = vmul.f32 0.6931472, %v1521_v32  ;;  %vm830_vm13 = vcmp.lt.f32.partialorder %v829_v1, 0.0004427343  ;;  %vm392_vm14 = vcmp.ne.f32.partialorder %v2528_v50, %v2528_v50  ;;  %v924_v1 = vld [vmem:[#allocation7 + $0x98] sm:$0xff]  ;;  %v921_v32 = vld [vmem:[#allocation7 + $0x80] sm:$0xff] }
 0x1b7   :  { %1014 = vperm.xlu1 %1395, %v888_v8   ;;  %v887_v35 = vsel %vm375_vm12, %v2527_v33, %v855_v23  ;;  %vm391_vm15 = vcmp.ne.f32.partialorder %v2529_v10, %v2529_v10 }
 0x1b8   :  { %v1523_v27 = vpop.eup %1522  ;;  %1009 = vperm.xlu0 %1394, %v887_v35   ;;  %v840_v56 = vsel %vm839_vm11, %v837_v39, %v834_v45  ;;  %v907_v45 = vld [vmem:[#allocation7 + $0x10] sm:$0xff] }
 0x1b9   :  { %v825_v43 = vmul.f32 0.6931472, %v1523_v27  ;;  %v872_v17 = vadd.f32 %v840_v56, %v360_v44 }
 0x1bb   :  { %v831_v24 = vsel %vm830_vm13, %v828_v12, %v825_v43  ;;  %v904_v52 = vsel %vm392_vm14, %v2528_v50, %v872_v17 }
 0x1bc   :  { %v871_v9 = vadd.f32 %v831_v24, %v359_v20  ;;  %1094 = vperm.xlu1 %1395, %v904_v52  }
 0x1be   :  { %v903_v29 = vsel %vm391_vm15, %v2529_v10, %v871_v9 }
 0x1bf   :  { %1089 = vperm.xlu0 %1394, %v903_v29   ;;  %v909_v29 = vld [vmem:[#allocation7 + $0x20] sm:$0xff] }
 0x1e3   :  { %v1025_v46 = vpop.permute.xlu1 %1024 }
 0x1e4   :  { %v1114_v30 = vmul.f32 %v1025_v46, %v922_v51  ;;  %v926_v46 = vld [vmem:[#allocation7 + $0xa8] sm:$0xff] }
 0x1e5   :  { %v945_v42 = vpop.permute.xlu0 %944 }
 0x1e6   :  { %v1146_v15 = vadd.f32 %v1699_v58, %v1114_v30  ;;  %v1098_v11 = vmul.f32 %v945_v42, %v906_v55 }
 0x1e8   :  { %v955_v60 = vpop.permute.xlu1 %954  ;;  %1178 = vst [vmem:[#allocation8 + $0x88] sm:$0xff] %v1146_v15  ;;  %v1130_v34 = vadd.f32 %v1697_v57, %v1098_v11  ;;  %v923_v57 = vld [vmem:[#allocation7 + $0x90] sm:$0xff]  ;;  %v912_v11 = vld [vmem:[#allocation7 + $0x38] sm:$0xff] }
 0x1e9   :  { %v1100_v59 = vmul.f32 %v955_v60, %v908_v25  ;;  %v940_v16 = vpop.permute.xlu0 %939  ;;  %v925_v25 = vld [vmem:[#allocation7 + $0xa0] sm:$0xff]  ;;  %v911_v60 = vld [vmem:[#allocation7 + $0x30] sm:$0xff] }
 0x1ea   :  { %1162 = vst [vmem:[#allocation8 + $0x8] sm:$0xff] %v1130_v34  ;;  %v1097_v0 = vmul.f32 %v940_v16, %v905_v19 }
 0x1eb   :  { %v1132_v39 = vadd.f32 %v1709_v4, %v1100_v59  ;;  %v910_v4 = vld [vmem:[#allocation7 + $0x28] sm:$0xff] }
 0x1ec   :  { %v1035_v8 = vpop.permute.xlu1 %1034  ;;  %v1129_v23 = vadd.f32 %v1097_v0, %v1703_v61 }
 0x1ed   :  { %1164 = vst [vmem:[#allocation8 + $0x18] sm:$0xff] %v1132_v39  ;;  %v1116_v44 = vmul.f32 %v1035_v8, %v924_v1  ;;  %v1020_v58 = vpop.permute.xlu0 %1019  ;;  %v928_v1 = vld [vmem:[#allocation7 + $0xb8] sm:$0xff] }
 0x1ee   :  { %1161 = vst [vmem:[#allocation8] sm:$0xff] %v1129_v23  ;;  %v1113_v12 = vmul.f32 %v1020_v58, %v921_v32  ;;  %v927_v32 = vld [vmem:[#allocation7 + $0xb0] sm:$0xff] }
 0x1ef   :  { %v1148_v27 = vadd.f32 %v1711_v5, %v1116_v44  ;;  %v914_v44 = vld [vmem:[#allocation7 + $0x48] sm:$0xff] }
 0x1f0   :  { %v950_v20 = vpop.permute.xlu1 %949  ;;  %v1145_v35 = vadd.f32 %v1113_v12, %v1705_v62 }
 0x1f1   :  { %1180 = vst [vmem:[#allocation8 + $0x98] sm:$0xff] %v1148_v27  ;;  %v1099_v56 = vmul.f32 %v950_v20, %v907_v45  ;;  %v1030_v43 = vpop.permute.xlu0 %1029  ;;  %v930_v20 = vld [vmem:[#allocation7 + $0xc8] sm:$0xff] }
 0x1f2   :  { %1177 = vst [vmem:[#allocation8 + $0x80] sm:$0xff] %v1145_v35  ;;  %v1115_v17 = vmul.f32 %v1030_v43, %v923_v57  ;;  %v929_v43 = vld [vmem:[#allocation7 + $0xc0] sm:$0xff] }
 0x1f3   :  { %v1131_v61 = vadd.f32 %v1099_v56, %v1715_v13 }
 0x1f4   :  { %v965_v24 = vpop.permute.xlu1 %964  ;;  %v1147_v52 = vadd.f32 %v1115_v17, %v1717_v14 }
 0x1f5   :  { %1163 = vst [vmem:[#allocation8 + $0x10] sm:$0xff] %v1131_v61  ;;  %v1102_v9 = vmul.f32 %v965_v24, %v910_v4  ;;  %v916_v61 = vld [vmem:[#allocation7 + $0x58] sm:$0xff] }
 0x1f6   :  { %1179 = vst [vmem:[#allocation8 + $0x90] sm:$0xff] %v1147_v52 }
 0x1f7   :  { %v1134_v5 = vadd.f32 %v1721_v18, %v1102_v9  ;;  %v915_v9 = vld [vmem:[#allocation7 + $0x50] sm:$0xff] }
 0x1f8   :  { %v960_v51 = vpop.permute.xlu0 %959 }
 0x1f9   :  { %1166 = vst [vmem:[#allocation8 + $0x28] sm:$0xff] %v1134_v5  ;;  %v1101_v62 = vmul.f32 %v960_v51, %v909_v29  ;;  %v932_v51 = vld [vmem:[#allocation7 + $0xd8] sm:$0xff] }
 0x1fb   :  { %v1133_v55 = vadd.f32 %v1101_v62, %v1726_v22 }
 0x1fd   :  { %v1045_v30 = vpop.permute.xlu1 %1044  ;;  %1165 = vst [vmem:[#allocation8 + $0x20] sm:$0xff] %v1133_v55  ;;  %v931_v55 = vld [vmem:[#allocation7 + $0xd0] sm:$0xff] }
 0x1fe   :  { %v1118_v42 = vmul.f32 %v1045_v30, %v926_v46 }
 0x200   :  { %v1150_v13 = vadd.f32 %v1724_v21, %v1118_v42  ;;  %v1040_v15 = vpop.permute.xlu0 %1039 }
 0x201   :  { %v1117_v14 = vmul.f32 %v1040_v15, %v925_v25  ;;  %v918_v25 = vld [vmem:[#allocation7 + $0x68] sm:$0xff] }
 0x202   :  { %1182 = vst [vmem:[#allocation8 + $0xa8] sm:$0xff] %v1150_v13 }
 0x203   :  { %v1149_v19 = vadd.f32 %v1117_v14, %v1728_v26  ;;  %v975_v18 = vpop.permute.xlu1 %974  ;;  %v917_v14 = vld [vmem:[#allocation7 + $0x60] sm:$0xff] }
 0x204   :  { %v1104_v34 = vmul.f32 %v975_v18, %v912_v11  ;;  %v934_v18 = vld [vmem:[#allocation7 + $0xe8] sm:$0xff] }
 0x205   :  { %1181 = vst [vmem:[#allocation8 + $0xa0] sm:$0xff] %v1149_v19  ;;  %v970_v59 = vpop.permute.xlu0 %969 }
 0x206   :  { %v1136_v16 = vadd.f32 %v1733_v36, %v1104_v34  ;;  %v1103_v22 = vmul.f32 %v970_v59, %v911_v60  ;;  %v913_v36 = vld [vmem:[#allocation7 + $0x40] sm:$0xff] }
 0x207   :  { %v933_v59 = vld [vmem:[#allocation7 + $0xe0] sm:$0xff] }
 0x208   :  { %1168 = vst [vmem:[#allocation8 + $0x38] sm:$0xff] %v1136_v16  ;;  %v1135_v0 = vadd.f32 %v1103_v22, %v1739_v41  ;;  %v1055_v39 = vpop.permute.xlu1 %1054 }
 0x209   :  { %v1120_v21 = vmul.f32 %v1055_v39, %v928_v1  ;;  %v920_v1 = vld [vmem:[#allocation7 + $0x78] sm:$0xff] }
 0x20a   :  { %1167 = vst [vmem:[#allocation8 + $0x30] sm:$0xff] %v1135_v0 }
 0x20b   :  { %v1152_v8 = vadd.f32 %v1735_v37, %v1120_v21  ;;  %v1050_v23 = vpop.permute.xlu0 %1049 }
 0x20c   :  { %v1119_v26 = vmul.f32 %v1050_v23, %v927_v32  ;;  %v936_v23 = vld [vmem:[#allocation7 + $0xf8] sm:$0xff] }
 0x20d   :  { %1184 = vst [vmem:[#allocation8 + $0xb8] sm:$0xff] %v1152_v8 }
 0x20e   :  { %v1151_v58 = vadd.f32 %v1119_v26, %v1742_v48  ;;  %v985_v45 = vpop.permute.xlu1 %984 }
 0x20f   :  { %v1106_v12 = vmul.f32 %v985_v45, %v914_v44 }
 0x210   :  { %1183 = vst [vmem:[#allocation8 + $0xb0] sm:$0xff] %v1151_v58 }
 0x211   :  { %v1138_v27 = vadd.f32 %v1744_v49, %v1106_v12 }
 0x212   :  { %v980_v57 = vpop.permute.xlu0 %979 }
 0x213   :  { %1170 = vst [vmem:[#allocation8 + $0x48] sm:$0xff] %v1138_v27  ;;  %v1105_v41 = vmul.f32 %v980_v57, %v913_v36 }
 0x215   :  { %v1137_v35 = vadd.f32 %v1105_v41, %v2487_v3 }
 0x216   :  { %v1065_v56 = vpop.permute.xlu1 %1064 }
 0x217   :  { %1169 = vst [vmem:[#allocation8 + $0x40] sm:$0xff] %v1137_v35  ;;  %v1122_v37 = vmul.f32 %v1065_v56, %v930_v20 }
 0x219   :  { %v1154_v4 = vadd.f32 %v2488_v31, %v1122_v37  ;;  %v1060_v17 = vpop.permute.xlu0 %1059 }
 0x21a   :  { %v1121_v48 = vmul.f32 %v1060_v17, %v929_v43 }
 0x21b   :  { %1186 = vst [vmem:[#allocation8 + $0xc8] sm:$0xff] %v1154_v4 }
 0x21c   :  { %v1153_v24 = vadd.f32 %v1121_v48, %v2495_v40  ;;  %v995_v52 = vpop.permute.xlu1 %994 }
 0x21d   :  { %v1108_v49 = vmul.f32 %v995_v52, %v916_v61 }
 0x21e   :  { %1185 = vst [vmem:[#allocation8 + $0xc0] sm:$0xff] %v1153_v24  ;;  %v990_v29 = vpop.permute.xlu0 %989 }
 0x21f   :  { %v1140_v5 = vadd.f32 %v2499_v54, %v1108_v49  ;;  %v1107_v3 = vmul.f32 %v990_v29, %v915_v9 }
 0x221   :  { %1172 = vst [vmem:[#allocation8 + $0x58] sm:$0xff] %v1140_v5  ;;  %v1139_v62 = vadd.f32 %v1107_v3, %v2502_v28 }
 0x222   :  { %v1075_v46 = vpop.permute.xlu1 %1074 }
 0x223   :  { %1171 = vst [vmem:[#allocation8 + $0x50] sm:$0xff] %v1139_v62  ;;  %v1124_v31 = vmul.f32 %v1075_v46, %v932_v51 }
 0x225   :  { %v1156_v30 = vadd.f32 %v2504_v6, %v1124_v31  ;;  %v1070_v42 = vpop.permute.xlu0 %1069 }
 0x226   :  { %v1123_v40 = vmul.f32 %v1070_v42, %v931_v55 }
 0x227   :  { %1188 = vst [vmem:[#allocation8 + $0xd8] sm:$0xff] %v1156_v30 }
 0x228   :  { %v1155_v13 = vadd.f32 %v1123_v40, %v2508_v47  ;;  %v1005_v15 = vpop.permute.xlu1 %1004 }
 0x229   :  { %v1110_v54 = vmul.f32 %v1005_v15, %v918_v25 }
 0x22a   :  { %1187 = vst [vmem:[#allocation8 + $0xd0] sm:$0xff] %v1155_v13 }
 0x22b   :  { %v1142_v11 = vadd.f32 %v2512_v63, %v1110_v54  ;;  %v919_v63 = vld [vmem:[#allocation7 + $0x70] sm:$0xff] }
 0x22d   :  { %v1000_v19 = vpop.permute.xlu0 %999  ;;  %1174 = vst [vmem:[#allocation8 + $0x68] sm:$0xff] %v1142_v11 }
 0x22e   :  { %v1109_v28 = vmul.f32 %v1000_v19, %v917_v14 }
 0x230   :  { %v1141_v60 = vadd.f32 %v1109_v28, %v2517_v7  ;;  %v1085_v34 = vpop.permute.xlu1 %1084 }
 0x231   :  { %v1126_v6 = vmul.f32 %v1085_v34, %v934_v18 }
 0x232   :  { %1173 = vst [vmem:[#allocation8 + $0x60] sm:$0xff] %v1141_v60 }
 0x233   :  { %v1158_v16 = vadd.f32 %v2518_v53, %v1126_v6  ;;  %v1080_v22 = vpop.permute.xlu0 %1079  ;;  %v935_v53 = vld [vmem:[#allocation7 + $0xf0] sm:$0xff] }
 0x234   :  { %v1125_v47 = vmul.f32 %v1080_v22, %v933_v59 }
 0x235   :  { %1190 = vst [vmem:[#allocation8 + $0xe8] sm:$0xff] %v1158_v16 }
 0x236   :  { %v1157_v0 = vadd.f32 %v1125_v47, %v2523_v2  ;;  %v1015_v39 = vpop.permute.xlu1 %1014 }
 0x237   :  { %v1112_v21 = vmul.f32 %v1015_v39, %v920_v1  ;;  %v1010_v32 = vpop.permute.xlu0 %1009 }
 0x238   :  { %1189 = vst [vmem:[#allocation8 + $0xe0] sm:$0xff] %v1157_v0  ;;  %v1111_v7 = vmul.f32 %v1010_v32, %v919_v63 }
 0x239   :  { %v1144_v8 = vadd.f32 %v2526_v38, %v1112_v21 }
 0x23a   :  { %v1143_v26 = vadd.f32 %v1111_v7, %v2527_v33 }
 0x23b   :  { %1176 = vst [vmem:[#allocation8 + $0x78] sm:$0xff] %v1144_v8  ;;  %v1095_v44 = vpop.permute.xlu1 %1094 }
 0x23c   :  { %1175 = vst [vmem:[#allocation8 + $0x70] sm:$0xff] %v1143_v26  ;;  %v1128_v58 = vmul.f32 %v1095_v44, %v936_v23 }
 0x23e   :  { %v1090_v45 = vpop.permute.xlu0 %1089  ;;  %v1160_v2 = vadd.f32 %v2528_v50, %v1128_v58 }
 0x23f   :  { %v1127_v12 = vmul.f32 %v1090_v45, %v935_v53 }
 0x240   :  { %1192 = vst [vmem:[#allocation8 + $0xf8] sm:$0xff] %v1160_v2 }
 0x241   :  { %v1159_v36 = vadd.f32 %v1127_v12, %v2529_v10 }
 0x243   :  { %1191 = vst [vmem:[#allocation8 + $0xf0] sm:$0xff] %v1159_v36 }
 0x244   :  { %1601 = shalt.err (!%p1598_p0)
}
 0x245   :  { %s1602_s27 = scalar_lea.hbm %s2394_s3, 4096 }
 0x246   :  { %p1603_p1 = scmp.ne.s32.totalorder %s2394_s3, %s1602_s27  ;;  %p1606_p2 = scmp.lt.u32.totalorder %s1602_s27, %s2394_s3 }
 0x248   :  { %p1608_p3 = pnand %p1606_p2, %p1603_p1 }
 0x24a   :  { %1611 = shalt.err (!%p1608_p3)
}
 0x24b   :  { %1204 = dma.vmem_to_hbm [thread:$0]  %s1199_s21, 4096, %s2394_s3, [#allocation4], %s1620_s24, %s1620_s24, %s1621_s25  }
 0x24c   :  { %1616 = dma.done.wait [#allocation4], 4096  }
 0x24d   :  { %1617 = vsyncadd [#allocation4], 4294963200 }
 0x24e   :  { %1208 = vsyncpa [#allocation3], 1 }
 0x24f   :  { %1209 = vsyncpa [#allocation6], 1 }
 0x250   :  { %1210 = vsyncpa [#allocation4], 1 }

</bundles_post_ra>
